<compile_context>
chip_gen: v6e
topology: v6e:2x2x1
jax: 0.10.0
libtpu: 0.0.40
codegen_flags: <defaults>
</compile_context>

<pallas_src>
import jax
import jax.numpy as jnp
from jax import lax
from jax.experimental import pallas as pl
from jax.experimental.pallas import tpu as pltpu

EPS = 1e-5
_COL_PAD = 8   # sublane-aligned low-side column pad offset in the depthwise scratch


# --------------------------------------------------------------------------
# Kernel 1: deconv taps + BN + ReLU + two 1x1 convs (BN folded), stacked taps
# --------------------------------------------------------------------------
def _kernel_up_pw(x_ref, wt_ref, bu1_ref, wu2_ref, bu2_ref, w1_ref, bc1_ref, out_ref):
    # x_ref  : (P, Cin)  with P = row_block * W flattened input pixels (whole rows)
    # wt_ref : (4, Cin)  deconv tap weights, BN1 scale folded in (tap k = 2*a + b)
    # out_ref: (row_block, 2, W, 2*Cout)  laid out [row, row-parity a, col j, b*Cout+c]
    P, Cin = x_ref.shape
    row_block, _, W, c2 = out_ref.shape
    Cout = c2 // 2

    x = x_ref[...]
    wt = wt_ref[...]
    bu1 = bu1_ref[...]

    # depthwise ConvTranspose2d(k=2, s=2, groups=Cin): tap (a, b) of every pixel,
    # BN1 (scale folded into wt) + ReLU.  Stack all 4 taps along the row axis so
    # each of the two 1x1 convs below is a single MXU matmul.
    z = jnp.maximum(x[None, :, :] * wt[:, None, :] + bu1[None, :, :], 0.0)  # (4,P,Cin)
    z = z.reshape(4 * P, Cin)                                   # leading-dim collapse

    y = jnp.dot(z, wu2_ref[...], preferred_element_type=jnp.float32)   # up[3] 1x1
    y = jnp.maximum(y + bu2_ref[...], 0.0)                              # up[4:6] BN+ReLU
    t = jnp.dot(y, w1_ref[...], preferred_element_type=jnp.float32)    # conv[0] 1x1
    t = jnp.maximum(t + bc1_ref[...], 0.0)                              # conv[1:3] BN+ReLU

    # Split back into the 4 taps and interleave: row parity a holds taps (a,0)|(a,1)
    # concatenated on channels.  (R, 2, W, 2*Cout) row-major == (N, 2H, 2W, Cout).
    row0 = jnp.concatenate([t[0 * P:1 * P], t[1 * P:2 * P]], axis=-1)   # (P, 2*Cout)
    row1 = jnp.concatenate([t[2 * P:3 * P], t[3 * P:4 * P]], axis=-1)
    out_ref[:, 0, :, :] = row0.reshape(row_block, W, 2 * Cout).astype(out_ref.dtype)
    out_ref[:, 1, :, :] = row1.reshape(row_block, W, 2 * Cout).astype(out_ref.dtype)


# --------------------------------------------------------------------------
# Kernel 2 (fused): depthwise 3x3 (padding=2) + BN + ReLU + final 1x1 + ReLU
# --------------------------------------------------------------------------
def _kernel_dw_pw(a_ref, wd_ref, bc2_ref, w3_ref, out_ref, ap_ref):
    # a_ref  : (1, H2, W2, C)  bf16/f32 activations from K1
    # wd_ref : (3, 3, C) depthwise weights (BN2 scale folded);  bc2_ref: (1, 1, C)
    # w3_ref : (C, Cout) final 1x1 conv weight (fused epilogue; removes old K3)
    # out_ref: (1, H3, W3, Cout)  with H3 = H2 + 2, W3 = W2 + 2  (padding=2 conv)
    # ap_ref : persistent VMEM scratch (H2 + 4, W3p + _COL_PAD, C) f32: zero-padded
    #          copy of `a` with the interior at rows [2, 2+H2), cols [8, 8+W2).
    #          W3p = ceil8(W3) so the per-strip pixel-flatten stays tile-aligned.
    H2, W2, C = a_ref.shape[1:]
    H3, W3 = H2 + 2, W2 + 2
    Cout = out_ref.shape[3]
    Wp = ap_ref.shape[1]
    W3p = Wp - _COL_PAD
    strip_h = min(8, H3)
    nstrips = pl.cdiv(H3, strip_h)

    # Zero only the border strips the 9-tap reads actually touch (scratch persists
    # across grid steps; the interior is fully overwritten below).  This replaces
    # the previous full-frame scratch zero and is megacore-safe.
    ap_ref[0:2, :, :] = jnp.zeros((2, Wp, C), jnp.float32)
    ap_ref[2 + H2:2 + H2 + 2, :, :] = jnp.zeros((2, Wp, C), jnp.float32)
    ap_ref[:, _COL_PAD - 2:_COL_PAD, :] = jnp.zeros((H2 + 4, 2, C), jnp.float32)
    ap_ref[:, _COL_PAD + W2:Wp, :] = jnp.zeros((H2 + 4, Wp - _COL_PAD - W2, C),
                                               jnp.float32)
    ap_ref[2:2 + H2, _COL_PAD:_COL_PAD + W2, :] = a_ref[0].astype(jnp.float32)

    wd = wd_ref[...].astype(jnp.float32)
    bc2 = bc2_ref[...].astype(jnp.float32)
    w3 = w3_ref[...].astype(jnp.float32)

    # Strip-wise accumulation: 8 output rows at a time so the f32 accumulator stays
    # in vregs instead of spilling a full-frame (H3, W3, C) buffer to VMEM.  The
    # last strip is clamped (overlapping rows recompute identical values).
    @pl.loop(0, nstrips)
    def _(s):
        start = jnp.minimum(s * strip_h, H3 - strip_h)
        acc = jnp.zeros((strip_h, W3p, C), jnp.float32)
        for ki in range(3):                # static 3x3 tap loop (unrolled)
            for kj in range(3):
                # output (oi, oj) reads a[oi+ki-2, oj+kj-2]  -> ap[oi+ki, oj+kj+6]
                acc = acc + (ap_ref[pl.ds(start + ki, strip_h),
                                    pl.ds(_COL_PAD - 2 + kj, W3p), :]
                             * wd[ki, kj])
        b = jnp.maximum(acc + bc2, 0.0)                         # conv[4:6] BN + ReLU
        # Fused conv[6] 1x1 + ReLU (was a 3rd pallas_call = extra HBM round trip).
        # Pixel-flatten is layout-preserving because W3p % 8 == 0.
        o = jnp.dot(b.reshape(strip_h * W3p, C), w3,
                    preferred_element_type=jnp.float32)
        o = jnp.maximum(o, 0.0).reshape(strip_h, W3p, Cout)
        out_ref[0, pl.ds(start, strip_h), :, :] = o[:, :W3, :].astype(out_ref.dtype)


# --------------------------------------------------------------------------
# Wrapper
# --------------------------------------------------------------------------
def mobile_scale_up_v2(x, fp, *, row_block=None, inter_dtype=jnp.bfloat16):
    """x: (N, H, W, Cin) float32  ->  (N, 2H+2, 2W+2, Cout) float32."""
    N, H, W, Cin = x.shape
    Cout = fp["w1_eff"].shape[1]
    R = N * H                               # flattened (batch, input-row) axis
    if row_block is None:
        row_block = max(1, 2048 // W)       # ~8K matmul rows per K1 grid step
    row_block = min(row_block, R)
    P = row_block * W

    # ---- K1: deconv taps + 1x1 convs (BN folded), interleaved-ready bf16 output --
    x2d = x.reshape(R * W, Cin)                              # free reshape
    up = pl.pallas_call(
        _kernel_up_pw,
        out_shape=jax.ShapeDtypeStruct((R, 2, W, 2 * Cout), inter_dtype),
        grid_spec=pltpu.PrefetchScalarGridSpec(
            num_scalar_prefetch=0,
            grid=(pl.cdiv(R, row_block),),
            in_specs=[
                pl.BlockSpec((P, Cin), lambda i: (i, 0)),
                pl.BlockSpec((4, Cin), lambda i: (0, 0)),
                pl.BlockSpec((1, Cin), lambda i: (0, 0)),
                pl.BlockSpec((Cin, Cin), lambda i: (0, 0)),
                pl.BlockSpec((1, Cin), lambda i: (0, 0)),
                pl.BlockSpec((Cin, Cout), lambda i: (0, 0)),
                pl.BlockSpec((1, Cout), lambda i: (0, 0)),
            ],
            out_specs=pl.BlockSpec((row_block, 2, W, 2 * Cout),
                                   lambda i: (i, 0, 0, 0)),
        ),
        compiler_params=pltpu.CompilerParams(dimension_semantics=("parallel",)),
    )(x2d, fp["wt_eff"], fp["bu1"], fp["wu2_eff"], fp["bu2"], fp["w1_eff"], fp["bc1"])

    H2, W2 = 2 * H, 2 * W
    a = up.reshape(N, H2, W2, Cout)     # free reshape: identical row-major layout

    # ---- K2 (fused): depthwise 3x3 (pad=2) + BN + ReLU + final 1x1 + ReLU -------
    H3, W3 = H2 + 2, W2 + 2
    W3p = ((W3 + 7) // 8) * 8           # sublane-aligned padded output width
    out = pl.pallas_call(
        _kernel_dw_pw,
        out_shape=jax.ShapeDtypeStruct((N, H3, W3, Cout), jnp.float32),
        grid_spec=pltpu.PrefetchScalarGridSpec(
            num_scalar_prefetch=0,
            grid=(N,),
            in_specs=[
                pl.BlockSpec((1, H2, W2, Cout), lambda n: (n, 0, 0, 0)),
                pl.BlockSpec((3, 3, Cout), lambda n: (0, 0, 0)),
                pl.BlockSpec((1, 1, Cout), lambda n: (0, 0, 0)),
                pl.BlockSpec((Cout, Cout), lambda n: (0, 0)),
            ],
            out_specs=pl.BlockSpec((1, H3, W3, Cout), lambda n: (n, 0, 0, 0)),
            scratch_shapes=[
                pltpu.VMEM((H2 + 4, W3p + _COL_PAD, Cout), jnp.float32)],
        ),
        compiler_params=pltpu.CompilerParams(dimension_semantics=("parallel",)),
    )(a, fp["wd_eff"], fp["bc2"], fp["w3"])
    return out


# --------------------------------------------------------------------------
# Parameters: raw (torch-equivalent) params + eval-mode BatchNorm folding
# --------------------------------------------------------------------------
def init_params(key, in_size, out_size):
    ks = jax.random.split(key, 9)

    def kaiming(k, shape, fan_in):
        return jax.random.normal(k, shape, jnp.float32) * jnp.sqrt(2.0 / fan_in)

    def bn_stats(k, c):
        k1, k2, k3, k4 = jax.random.split(k, 4)
        return dict(
            g=1.0 + 0.2 * jax.random.normal(k1, (c,), jnp.float32),
            b=0.1 * jax.random.normal(k2, (c,), jnp.float32),
            m=0.1 * jax.random.normal(k3, (c,), jnp.float32),
            v=jax.random.uniform(k4, (c,), jnp.float32, 0.5, 1.5),
        )

    p = dict(
        # up[0]: ConvTranspose2d(in,in,2,s=2,groups=in)  torch (in,1,2,2) -> (2,2,Cin)
        wt=kaiming(ks[0], (2, 2, in_size), 1 * 2 * 2),
        # up[3]: ConvTranspose2d(in,in,1): y[o] = sum_i x[i] * w[i,o]
        wu2=kaiming(ks[1], (in_size, in_size), in_size),
        # conv[0]: Conv2d(in,out,1), stored transposed so y = x @ w1
        w1=kaiming(ks[2], (in_size, out_size), in_size),
        # conv[3]: depthwise Conv2d(out,out,3,padding=2,groups=out) -> (3,3,Cout)
        wd3=kaiming(ks[3], (3, 3, out_size), 1 * 3 * 3),
        # conv[6]: Conv2d(out,out,1), stored transposed
        w3=kaiming(ks[4], (out_size, out_size), out_size),
    )
    for name, k, c in (("bn_u1", ks[5], in_size), ("bn_u2", ks[6], in_size),
                       ("bn_c1", ks[7], out_size), ("bn_c2", ks[8], out_size)):
        s = bn_stats(k, c)
        p.update({f"{name}_{t}": s[t] for t in ("g", "b", "m", "v")})
    return p


def fold_params(p):
    """Fold eval-mode BatchNorm scales into the neighbouring conv weights."""
    def scale_bias(name):
        s = p[f"{name}_g"] * lax.rsqrt(p[f"{name}_v"] + EPS)
        return s, p[f"{name}_b"] - p[f"{name}_m"] * s

    su1, bu1 = scale_bias("bn_u1")
    su2, bu2 = scale_bias("bn_u2")
    sc1, bc1 = scale_bias("bn_c1")
    sc2, bc2 = scale_bias("bn_c2")
    cin = p["wu2"].shape[0]
    cout = p["w1"].shape[1]
    return dict(
        wt_eff=p["wt"].reshape(4, cin) * su1[None, :],     # tap k = 2*a + b
        bu1=bu1.reshape(1, cin),
        wu2_eff=p["wu2"] * su2[None, :],
        bu2=bu2.reshape(1, cin),
        w1_eff=p["w1"] * sc1[None, :],
        bc1=bc1.reshape(1, cout),
        wd_eff=p["wd3"] * sc2[None, None, :],
        bc2=bc2.reshape(1, 1, cout),
        w3=p["w3"],
    )


# --------------------------------------------------------------------------
# Pure-JAX reference (NHWC, unfolded BatchNorm) for validation
# --------------------------------------------------------------------------
def reference(x, p):
    N, H, W, Cin = x.shape
    Cout = p["w1"].shape[1]
    hi = lax.Precision.HIGHEST

    def bn(t, name):
        s = p[f"{name}_g"] * lax.rsqrt(p[f"{name}_v"] + EPS)
        return (t - p[f"{name}_m"]) * s + p[f"{name}_b"]

    wt = p["wt"]                                                     # (2,2,Cin)
    t = x[:, :, None, :, None, :] * wt[None, None, :, None, :, :]    # (N,H,2,W,2,C)
    up = t.reshape(N, 2 * H, 2 * W, Cin)
    up = jnp.maximum(bn(up, "bn_u1"), 0.0)
    up = jnp.maximum(bn(jnp.einsum("nhwc,cd->nhwd", up, p["wu2"], precision=hi),
                        "bn_u2"), 0.0)
    a = jnp.maximum(bn(jnp.einsum("nhwc,cd->nhwd", up, p["w1"], precision=hi),
                       "bn_c1"), 0.0)
    H2, W2 = 2 * H, 2 * W
    ap = jnp.pad(a, ((0, 0), (2, 2), (2, 2), (0, 0)))
    acc = jnp.zeros((N, H2 + 2, W2 + 2, Cout), jnp.float32)
    for ki in range(3):
        for kj in range(3):
            acc = acc + ap[:, ki:ki + H2 + 2, kj:kj + W2 + 2, :] * p["wd3"][ki, kj, :]
    b = jnp.maximum(bn(acc, "bn_c2"), 0.0)
    o = jnp.einsum("nhwc,cd->nhwd", b, p["w3"], precision=hi)
    return jnp.maximum(o, 0.0)


if __name__ == "__main__":
    key = jax.random.PRNGKey(0)
    k_param, k_x = jax.random.split(key)

    N, H, W = 2, 8, 16
    in_size, out_size = 8, 16

    raw = init_params(k_param, in_size, out_size)
    folded = fold_params(raw)
    x = jax.random.normal(k_x, (N, H, W, in_size), jnp.float32)   # NHWC input

    # row_block=8 -> 2 pipelined K1 grid steps (exercises the grid); fused K2 grid=N.
    out = mobile_scale_up_v2(x, folded, row_block=8)
    out = jax.block_until_ready(out)
    assert out.shape == (N, 2 * H + 2, 2 * W + 2, out_size), out.shape

    ref = reference(x, raw)
    err = float(jnp.max(jnp.abs(out - ref)))
    # bf16 inter-stage tensor -> slightly looser tolerance than the all-f32 path.
    if not bool(jnp.allclose(out, ref, rtol=2e-2, atol=3e-2)):
        raise AssertionError(f"mismatch vs reference: max abs diff = {err}")

    print("KERNEL_OK")
</pallas_src>

<mosaic_0001>
module attributes {stable_mosaic.version = 11 : i64} {
  func.func @_kernel_up_pw(%arg0: i32, %arg1: memref<128x8xf32, #tpu.memory_space<vmem>>, %arg2: memref<4x8xf32, #tpu.memory_space<vmem>>, %arg3: memref<1x8xf32, #tpu.memory_space<vmem>>, %arg4: memref<8x8xf32, #tpu.memory_space<vmem>>, %arg5: memref<1x8xf32, #tpu.memory_space<vmem>>, %arg6: memref<8x16xf32, #tpu.memory_space<vmem>>, %arg7: memref<1x16xf32, #tpu.memory_space<vmem>>, %arg8: memref<8x2x16x32xbf16, #tpu.memory_space<vmem>>) attributes {dimension_semantics = [#tpu.dimension_semantics<parallel>], iteration_bounds = array<i64: 2>, scalar_prefetch = 0 : i64, scratch_operands = 0 : i64, tpu.core_type = #tpu.core_type<tc>, window_params = [{transform_indices = @transform_0, window_bounds = array<i64: 128, 8>}, {pipeline_mode = #tpu.pipeline_mode<synchronous>, transform_indices = @transform_1, window_bounds = array<i64: 4, 8>}, {pipeline_mode = #tpu.pipeline_mode<synchronous>, transform_indices = @transform_2, window_bounds = array<i64: 1, 8>}, {pipeline_mode = #tpu.pipeline_mode<synchronous>, transform_indices = @transform_3, window_bounds = array<i64: 8, 8>}, {pipeline_mode = #tpu.pipeline_mode<synchronous>, transform_indices = @transform_4, window_bounds = array<i64: 1, 8>}, {pipeline_mode = #tpu.pipeline_mode<synchronous>, transform_indices = @transform_5, window_bounds = array<i64: 8, 16>}, {pipeline_mode = #tpu.pipeline_mode<synchronous>, transform_indices = @transform_6, window_bounds = array<i64: 1, 16>}, {transform_indices = @transform_7, window_bounds = array<i64: 8, 2, 16, 32>}]} {
    %c0 = arith.constant 0 : index
    %c0_0 = arith.constant 0 : index
    %0 = vector.load %arg1[%c0, %c0_0] : memref<128x8xf32, #tpu.memory_space<vmem>>, vector<128x8xf32>
    %c0_1 = arith.constant 0 : index
    %c0_2 = arith.constant 0 : index
    %1 = vector.load %arg2[%c0_1, %c0_2] : memref<4x8xf32, #tpu.memory_space<vmem>>, vector<4x8xf32>
    %c0_3 = arith.constant 0 : index
    %c0_4 = arith.constant 0 : index
    %2 = vector.load %arg3[%c0_3, %c0_4] : memref<1x8xf32, #tpu.memory_space<vmem>>, vector<1x8xf32>
    %3 = vector.shape_cast %0 : vector<128x8xf32> to vector<1x128x8xf32>
    %4 = vector.shape_cast %1 : vector<4x8xf32> to vector<4x1x8xf32>
    %5 = vector.broadcast %3 : vector<1x128x8xf32> to vector<4x128x8xf32>
    %6 = vector.broadcast %4 : vector<4x1x8xf32> to vector<4x128x8xf32>
    %7 = arith.mulf %5, %6 : vector<4x128x8xf32>
    %8 = vector.shape_cast %2 : vector<1x8xf32> to vector<1x1x8xf32>
    %9 = vector.broadcast %8 : vector<1x1x8xf32> to vector<4x128x8xf32>
    %10 = arith.addf %7, %9 : vector<4x128x8xf32>
    %cst = arith.constant 0.000000e+00 : f32
    %11 = vector.broadcast %cst : f32 to vector<4x128x8xf32>
    %12 = arith.maximumf %10, %11 : vector<4x128x8xf32>
    %13 = vector.shape_cast %12 : vector<4x128x8xf32> to vector<512x8xf32>
    %c0_5 = arith.constant 0 : index
    %c0_6 = arith.constant 0 : index
    %14 = vector.load %arg4[%c0_5, %c0_6] : memref<8x8xf32, #tpu.memory_space<vmem>>, vector<8x8xf32>
    %cst_7 = arith.constant dense<0.000000e+00> : vector<512x8xf32>
    %15 = tpu.matmul %13, %14, %cst_7 {dimension_numbers = #tpu.dot_dimension_numbers<[1], [0], [0], [1], [0, 0, 1, 1], [], []>} : vector<512x8xf32>, vector<8x8xf32>, vector<512x8xf32> -> vector<512x8xf32>
    %c0_8 = arith.constant 0 : index
    %c0_9 = arith.constant 0 : index
    %16 = vector.load %arg5[%c0_8, %c0_9] : memref<1x8xf32, #tpu.memory_space<vmem>>, vector<1x8xf32>
    %17 = vector.broadcast %16 : vector<1x8xf32> to vector<512x8xf32>
    %18 = arith.addf %15, %17 : vector<512x8xf32>
    %cst_10 = arith.constant 0.000000e+00 : f32
    %19 = vector.broadcast %cst_10 : f32 to vector<512x8xf32>
    %20 = arith.maximumf %18, %19 : vector<512x8xf32>
    %c0_11 = arith.constant 0 : index
    %c0_12 = arith.constant 0 : index
    %21 = vector.load %arg6[%c0_11, %c0_12] : memref<8x16xf32, #tpu.memory_space<vmem>>, vector<8x16xf32>
    %cst_13 = arith.constant dense<0.000000e+00> : vector<512x16xf32>
    %22 = tpu.matmul %20, %21, %cst_13 {dimension_numbers = #tpu.dot_dimension_numbers<[1], [0], [0], [1], [0, 0, 1, 1], [], []>} : vector<512x8xf32>, vector<8x16xf32>, vector<512x16xf32> -> vector<512x16xf32>
    %c0_14 = arith.constant 0 : index
    %c0_15 = arith.constant 0 : index
    %23 = vector.load %arg7[%c0_14, %c0_15] : memref<1x16xf32, #tpu.memory_space<vmem>>, vector<1x16xf32>
    %24 = vector.broadcast %23 : vector<1x16xf32> to vector<512x16xf32>
    %25 = arith.addf %22, %24 : vector<512x16xf32>
    %cst_16 = arith.constant 0.000000e+00 : f32
    %26 = vector.broadcast %cst_16 : f32 to vector<512x16xf32>
    %27 = arith.maximumf %25, %26 : vector<512x16xf32>
    %28 = vector.extract_strided_slice %27 {offsets = [0, 0], sizes = [128, 16], strides = [1, 1]} : vector<512x16xf32> to vector<128x16xf32>
    %29 = vector.extract_strided_slice %27 {offsets = [128, 0], sizes = [128, 16], strides = [1, 1]} : vector<512x16xf32> to vector<128x16xf32>
    %30 = tpu.concatenate %28, %29 in 1 : vector<128x16xf32>, vector<128x16xf32> -> vector<128x32xf32>
    %31 = vector.extract_strided_slice %27 {offsets = [256, 0], sizes = [128, 16], strides = [1, 1]} : vector<512x16xf32> to vector<128x16xf32>
    %32 = vector.extract_strided_slice %27 {offsets = [384, 0], sizes = [128, 16], strides = [1, 1]} : vector<512x16xf32> to vector<128x16xf32>
    %33 = tpu.concatenate %31, %32 in 1 : vector<128x16xf32>, vector<128x16xf32> -> vector<128x32xf32>
    %34 = vector.shape_cast %30 : vector<128x32xf32> to vector<8x16x32xf32>
    %35 = arith.truncf %34 : vector<8x16x32xf32> to vector<8x16x32xbf16>
    %c0_17 = arith.constant 0 : index
    %c0_18 = arith.constant 0 : index
    %c0_19 = arith.constant 0 : index
    %c0_20 = arith.constant 0 : index
    %36 = vector.load %arg8[%c0_17, %c0_18, %c0_19, %c0_20] : memref<8x2x16x32xbf16, #tpu.memory_space<vmem>>, vector<8x1x16x32xbf16>
    %37 = vector.shape_cast %36 : vector<8x1x16x32xbf16> to vector<8x16x32xbf16>
    %38 = vector.shape_cast %35 : vector<8x16x32xbf16> to vector<8x1x16x32xbf16>
    tpu.vector_store %arg8[%c0_17, %c0_18, %c0_19, %c0_20], %38 {strides = array<i32>} : memref<8x2x16x32xbf16, #tpu.memory_space<vmem>>, vector<8x1x16x32xbf16>,
    %39 = vector.shape_cast %33 : vector<128x32xf32> to vector<8x16x32xf32>
    %40 = arith.truncf %39 : vector<8x16x32xf32> to vector<8x16x32xbf16>
    %c0_21 = arith.constant 0 : index
    %c1 = arith.constant 1 : index
    %c0_22 = arith.constant 0 : index
    %c0_23 = arith.constant 0 : index
    %41 = vector.load %arg8[%c0_21, %c1, %c0_22, %c0_23] : memref<8x2x16x32xbf16, #tpu.memory_space<vmem>>, vector<8x1x16x32xbf16>
    %42 = vector.shape_cast %41 : vector<8x1x16x32xbf16> to vector<8x16x32xbf16>
    %43 = vector.shape_cast %40 : vector<8x16x32xbf16> to vector<8x1x16x32xbf16>
    tpu.vector_store %arg8[%c0_21, %c1, %c0_22, %c0_23], %43 {strides = array<i32>} : memref<8x2x16x32xbf16, #tpu.memory_space<vmem>>, vector<8x1x16x32xbf16>,
    return
  }
  func.func @transform_0(%arg0: i32) -> (i32, i32) {
    %c0_i32 = arith.constant 0 : i32
    %c0_i32_0 = arith.constant 0 : i32
    return %arg0, %c0_i32 : i32, i32
  }
  func.func @transform_1(%arg0: i32) -> (i32, i32) {
    %c0_i32 = arith.constant 0 : i32
    %c0_i32_0 = arith.constant 0 : i32
    %c0_i32_1 = arith.constant 0 : i32
    return %c0_i32, %c0_i32_0 : i32, i32
  }
  func.func @transform_2(%arg0: i32) -> (i32, i32) {
    %c0_i32 = arith.constant 0 : i32
    %c0_i32_0 = arith.constant 0 : i32
    %c0_i32_1 = arith.constant 0 : i32
    return %c0_i32, %c0_i32_0 : i32, i32
  }
  func.func @transform_3(%arg0: i32) -> (i32, i32) {
    %c0_i32 = arith.constant 0 : i32
    %c0_i32_0 = arith.constant 0 : i32
    %c0_i32_1 = arith.constant 0 : i32
    return %c0_i32, %c0_i32_0 : i32, i32
  }
  func.func @transform_4(%arg0: i32) -> (i32, i32) {
    %c0_i32 = arith.constant 0 : i32
    %c0_i32_0 = arith.constant 0 : i32
    %c0_i32_1 = arith.constant 0 : i32
    return %c0_i32, %c0_i32_0 : i32, i32
  }
  func.func @transform_5(%arg0: i32) -> (i32, i32) {
    %c0_i32 = arith.constant 0 : i32
    %c0_i32_0 = arith.constant 0 : i32
    %c0_i32_1 = arith.constant 0 : i32
    return %c0_i32, %c0_i32_0 : i32, i32
  }
  func.func @transform_6(%arg0: i32) -> (i32, i32) {
    %c0_i32 = arith.constant 0 : i32
    %c0_i32_0 = arith.constant 0 : i32
    %c0_i32_1 = arith.constant 0 : i32
    return %c0_i32, %c0_i32_0 : i32, i32
  }
  func.func @transform_7(%arg0: i32) -> (i32, i32, i32, i32) {
    %c0_i32 = arith.constant 0 : i32
    %c0_i32_0 = arith.constant 0 : i32
    %c0_i32_1 = arith.constant 0 : i32
    %c0_i32_2 = arith.constant 0 : i32
    return %arg0, %c0_i32, %c0_i32_0, %c0_i32_1 : i32, i32, i32, i32
  }
}

</mosaic_0001>

<bundles_post_ra>
// kernel: tpu_custom_call.1
= control target key start
LH: loop header
LB: loop body
LE: loop exit
PB: predicated region body
PF: predicated region fallthrough
CT: control target
= control target key end

     0   :  { %12 = vsyncpa [#allocation3], 0  ;;  %s3942_s0 = inlined_call_operand.vmem [shape: f32[256,8], index: 0, kind: input, shape index: {}]   ;;  %s3943_s1 = inlined_call_operand.vmem [shape: f32[4,8], index: 1, kind: input, shape index: {}]   ;;  %s3944_s2 = inlined_call_operand.vmem [shape: f32[1,8], index: 2, kind: input, shape index: {}]   ;;  %s3945_s3 = inlined_call_operand.vmem [shape: f32[8,8], index: 3, kind: input, shape index: {}]   ;;  %s3946_s4 = inlined_call_operand.vmem [shape: f32[1,8], index: 4, kind: input, shape index: {}]   ;;  %s3947_s5 = inlined_call_operand.vmem [shape: f32[8,16], index: 5, kind: input, shape index: {}]   ;;  %s3948_s6 = inlined_call_operand.vmem [shape: f32[1,16], index: 6, kind: input, shape index: {}]   ;;  %s3949_s7 = inlined_call_operand.hbm [shape: bf16[16,2,16,32], index: 7, kind: output, shape index: {}]  }
   0x1   :  { %14 = vsyncpa [#allocation3 + $0x1], 0  ;;  %s3023_s24 = smov 0   ;;  %s3025_s25 = smov 0  }
   0x2   :  { %s3027_s26 = smov 0   ;;  %s3029_s27 = smov 0  }
   0x3 LB: > { %s3044_s28 = sadd.s32 4294967295, %s2976_s27   ;;  %s2240_s29 = sadd.s32 4294967294, %s2976_s27   ;;  %s2976_s27 = sphi %s3029_s27, %s3955_s27   ;;  %s2972_s26 = sphi %s3027_s26, %s3954_s26   ;;  %s2968_s25 = sphi %s3025_s25, %s3953_s25   ;;  %s2964_s24 = sphi %s3023_s24, %s3952_s24  }
   0x4   : > { %s3048_s30 = sadd.s32 1, %s2976_s27   ;;  %s179_s8 = sadd.s32 1, %s2972_s26 }
   0x5   : > { %s176_s9 = ssub.s32 %s2976_s27, %s3048_s30  ;;  %p189_p0 = scmp.ne.s32.totalorder %s2972_s26, %s2968_s25 }
   0x6   : > { %p177_p1 = scmp.eq.s32.totalorder %s176_s9, 0  ;;  %p190_p2 = scmp.eq.s32.totalorder %s3044_s28, 1 }
   0x7   : > { %p195_p3 = scmp.ne.s32.totalorder %s2968_s25, %s2964_s24  ;;  %p196_p4 = scmp.eq.s32.totalorder %s2240_s29, 1 }
   0x8   : > { %s3059_s10 = scalar_select %p177_p1, %s2972_s26, %s179_s8  }
   0x9   : > { %p3061_p5 = por %p190_p2, %p189_p0  ;;  %p3065_p6 = por %p196_p4, %p195_p3 }
   0xa   : > { %p2243_p7 = scmp.ge.s32.totalorder %s2976_s27, 1  ;;  %p241_p8 = scmp.lt.s32.totalorder %s2976_s27, 3 }
   0xc   : > { %p242_p9 = pnand %p2243_p7, %p241_p8 }
   0xd   : > { %s2245_s15 = sshll.u32 (!%p242_p9), %s3044_s28, 4  ;;  %s270_s17 = sand.u32 (!%p242_p9), 1, %s2968_s25  }
   0xe   : > { %245 = sbr.rel (%p242_p9) target bundleno = 696 (0x2b8), region = 48  ;;  %p274_p10 = scmp.lt.s32.totalorder (!%p242_p9), %s2245_s15, 31 }
   0xf   : > { %s2244_s18 = sshll.u32 (!%p242_p9), %s270_s17, 7  ;;  %s2466_s20 = sshll.u32 (!%p242_p9), %s3044_s28, 11 }
  0x10   : > { %s3743_s19 = scalar_lea.vmem (!%p242_p9), [#allocation2], %s2244_s18  ;;  %s3892_s29 = scalar_lea.hbm (!%p242_p9), %s3949_s7, %s2466_s20 }
  0x11   : > { %s3902_s28 = scalar_lea.sflag (!%p242_p9), [#allocation3], %s270_s17  ;;  %s2980_s9 = smov (!%p242_p9), [#allocation2]  }
  0x12   : > { %s2920_s13 = sshll.u32 (!%p242_p9), %s2980_s9, 4  ;;  %s2921_s13 = int_to_ptr.vmem [resolvable:$false] %s2920_s13 }
  0x13   : > { %v541_v0 = vld [vmem:[%s3945_s3] sm:$0xff]  ;;  %v310_v1 = vlaneseq  ;;  %v2978_v2 = vmov 1966171168   ;;  %s3957_s15 = smov (!%p274_p10, %s2245_s15), 31  ;;  %vm549_vm0 = vcmask 64512   ;;  %vm1904_vm1 = vcmask 130048  }
  0x14   : > { %2597 = vmatprep.subr.mxu0 %v541_v0  ;;  %v308_v3 = vunpack.c.l.s4 %v2978_v2  ;;  %s2246_s16 = sshll.u32 %s3957_s15, 3  ;;  %v2247_v6 = vld.sshfl [vmem:[%s3943_s1] sm:$0x33 pattern:$0x75316420]  ;;  %vm2065_vm2 = vcmask 257024  }
  0x15   : > { %2598 = vmatpush3.msra.mxu0 %v541_v0  ;;  %v311_v4 = vshrl.u32 %v310_v1, 7  ;;  %s3081_s21 = scalar_lea.vmem %s3942_s0, %s2246_s16  ;;  %v3107_v16 = vld [vmem:[%s3944_s2] ss:$0 sm:$0xff]  ;;  %v306_v43 = vcombine.high %v2247_v6, %v2247_v6  ;;  %s2979_s16 = smov 16  }
  0x16   : > { %v309_v5 = vunpack.c.0.s8 %v308_v3  ;;  %v3086_v9 = vld [vmem:[%s3081_s21] sm:$0xff]  ;;  %v3091_v11 = vld [vmem:[%s3081_s21 + $0x8] sm:$0xff]  ;;  %v3094_v12 = vld [vmem:[%s3081_s21 + $0x10] sm:$0xff]  ;;  %s2922_s14 = scalar_lea.vmem %s2921_s13, 4096 }
  0x17   : > { %v3083_v8 = vsub.s32 0, %v311_v4  ;;  %v3097_v13 = vld [vmem:[%s3081_s21 + $0x18] sm:$0xff]  ;;  %v3102_v15 = vld [vmem:[%s3081_s21 + $0x20] sm:$0xff]  ;;  %v3114_v21 = vld [vmem:[%s3081_s21 + $0x28] sm:$0xff] }
  0x18   : > { %v312_v7 = vsub.s32 %v309_v5, %v311_v4  ;;  %v3117_v22 = vld [vmem:[%s3081_s21 + $0x30] sm:$0xff]  ;;  %v3127_v30 = vld [vmem:[%s3081_s21 + $0x38] sm:$0xff]  ;;  %v3131_v35 = vld [vmem:[%s3081_s21 + $0x40] sm:$0xff] }
  0x19   : > { %v3141_v42 = vld [vmem:[%s3081_s21 + $0x48] sm:$0xff]  ;;  %v3144_v44 = vld [vmem:[%s3081_s21 + $0x50] sm:$0xff]  ;;  %v3153_v51 = vld [vmem:[%s3081_s21 + $0x58] sm:$0xff] }
  0x1a   : > { %v3088_v10 = vrot.slane %v2247_v6, %v312_v7  ;;  %v3156_v52 = vld [vmem:[%s3081_s21 + $0x60] sm:$0xff]  ;;  %v3159_v53 = vld [vmem:[%s3081_s21 + $0x68] sm:$0xff]  ;;  %v3161_v54 = vrot.slane %v306_v43, %v312_v7  ;;  %v3164_v55 = vld [vmem:[%s3081_s21 + $0x70] sm:$0xff] }
  0x1b   : > { %v3167_v56 = vld [vmem:[%s3081_s21 + $0x78] sm:$0xff]  ;;  %s2178_s21 = sshll.u32 %s3743_s19, 4  ;;  %s3894_s21 = int_to_ptr.vmem [resolvable:$true] %s2178_s21 }
  0x1c   : > { %v326_v14 = vrot.slane %v3088_v10, %v3083_v8  ;;  %v3180_v2 = vrot.slane %v3161_v54, %v3083_v8  ;;  %v321_v3 = vcombine.high %v3088_v10, %v3088_v10  ;;  %s2916_s8 = scalar_lea.vmem %s3894_s21, 2048  ;;  %p2923_p0 = scmp.lt.s32.totalorder %s3894_s21, %s2921_s13 }
  0x1d   : > { %p2917_p11 = scmp.ne.s32.totalorder %s3894_s21, %s2916_s8  ;;  %p2924_p1 = scmp.lt.s32.totalorder %s2922_s14, %s2916_s8 }
  0x1e   : > { %v343_v17 = vmul.f32 %v326_v14, %v3086_v9  ;;  %v344_v18 = vmul.f32 %v326_v14, %v3091_v11  ;;  %v345_v19 = vmul.f32 %v326_v14, %v3094_v12  ;;  %v346_v20 = vmul.f32 %v326_v14, %v3097_v13 }
  0x1f   : > { %v347_v23 = vmul.f32 %v326_v14, %v3102_v15  ;;  %v348_v28 = vmul.f32 %v326_v14, %v3114_v21  ;;  %v349_v29 = vmul.f32 %v326_v14, %v3117_v22  ;;  %v350_v36 = vmul.f32 %v326_v14, %v3127_v30  ;;  %p2918_p12 = pnand %p2917_p11, %p3061_p5  ;;  %p2925_p2 = por %p2924_p1, %p2923_p0 }
  0x20   : > { %v413_v24 = vadd.f32 %v3107_v16, %v343_v17  ;;  %v414_v25 = vadd.f32 %v3107_v16, %v344_v18  ;;  %v415_v26 = vadd.f32 %v3107_v16, %v345_v19  ;;  %v416_v27 = vadd.f32 %v3107_v16, %v346_v20 }
  0x21   : > { %v417_v34 = vadd.f32 %v3107_v16, %v347_v23  ;;  %v418_v38 = vadd.f32 %v3107_v16, %v348_v28  ;;  %v419_v40 = vadd.f32 %v3107_v16, %v349_v29  ;;  %v351_v41 = vmul.f32 %v326_v14, %v3131_v35  ;;  %p2919_p13 = pneg %p2918_p12 }
  0x22   : > { %v477_v31 = vmax.f32 %v413_v24, 0.0  ;;  %v478_v32 = vmax.f32 %v414_v25, 0.0  ;;  %v479_v33 = vmax.f32 %v415_v26, 0.0  ;;  %v480_v37 = vmax.f32 %v416_v27, 0.0 }
  0x23   : > { %v481_v39 = vmax.f32 %v417_v34, 0.0  ;;  %v420_v45 = vadd.f32 %v3107_v16, %v350_v36  ;;  %v482_v46 = vmax.f32 %v418_v38, 0.0  ;;  %v352_v47 = vmul.f32 %v326_v14, %v3141_v42  ;;  %p2926_p3 = pnand %p2925_p2, %p2919_p13 }
  0x24   : > { %2599 = vmatprep.mubr.msk.f32.mxu0 %vm549_vm0, %v477_v31  ;;  %v483_v48 = vmax.f32 %v419_v40, 0.0  ;;  %v421_v49 = vadd.f32 %v3107_v16, %v351_v41  ;;  %v353_v50 = vmul.f32 %v326_v14, %v3144_v44  ;;  %v354_v59 = vmul.f32 %v326_v14, %v3153_v51 }
  0x25   : > { %2600 = vmatmul.mubr.msk.f32.vlgmr.msra.gmra.mxu0 %vm549_vm0, %v478_v32  ;;  %v484_v57 = vmax.f32 %v420_v45, 0.0  ;;  %v422_v58 = vadd.f32 %v3107_v16, %v352_v47  ;;  %v355_v60 = vmul.f32 %v326_v14, %v3156_v52  ;;  %v356_v61 = vmul.f32 %v326_v14, %v3159_v53 }
  0x26   : > { %2602 = vmatprep.mubr.msk.f32.mxu0 %vm549_vm0, %v479_v33  ;;  %v485_v62 = vmax.f32 %v421_v49, 0.0  ;;  %v423_v63 = vadd.f32 %v3107_v16, %v353_v50  ;;  %v357_v0 = vmul.f32 %v326_v14, %v3164_v55  ;;  %v358_v1 = vmul.f32 %v326_v14, %v3167_v56 }
  0x27   : > { %v486_v4 = vmax.f32 %v422_v58, 0.0  ;;  %v424_v5 = vadd.f32 %v3107_v16, %v354_v59  ;;  %v425_v6 = vadd.f32 %v3107_v16, %v355_v60  ;;  %v426_v17 = vadd.f32 %v3107_v16, %v356_v61 }
  0x28   : > { %v487_v7 = vmax.f32 %v423_v63, 0.0  ;;  %v427_v14 = vadd.f32 %v3107_v16, %v357_v0  ;;  %v428_v18 = vadd.f32 %v3107_v16, %v358_v1  ;;  %v359_v19 = vmul.f32 %v3180_v2, %v3086_v9 }
  0x29   : > { %2603 = vmatmul.mubr.msk.f32.gmra.mxu0 %vm549_vm0, %v480_v37  ;;  %v360_v10 = vmul.f32 %v3180_v2, %v3091_v11  ;;  %v488_v20 = vmax.f32 %v424_v5, 0.0  ;;  %v489_v23 = vmax.f32 %v425_v6, 0.0  ;;  %v322_v24 = vcombine.high %v3161_v54, %v3161_v54 }
  0x2a   : > { %2605 = vmatprep.mubr.msk.f32.mxu0 %vm549_vm0, %v481_v39  ;;  %v490_v25 = vmax.f32 %v426_v17, 0.0  ;;  %v491_v26 = vmax.f32 %v427_v14, 0.0  ;;  %v492_v27 = vmax.f32 %v428_v18, 0.0  ;;  %v3200_v28 = vrot.slane %v321_v3, %v3083_v8 }
  0x2b   : > { %v429_v29 = vadd.f32 %v3107_v16, %v359_v19  ;;  %v361_v31 = vmul.f32 %v3180_v2, %v3094_v12  ;;  %v362_v32 = vmul.f32 %v3180_v2, %v3097_v13  ;;  %v363_v33 = vmul.f32 %v3180_v2, %v3102_v15 }
  0x2c   : > { %v430_v34 = vadd.f32 %v3107_v16, %v360_v10  ;;  %v376_v36 = vmul.f32 %v3200_v28, %v3091_v11  ;;  %v377_v37 = vmul.f32 %v3200_v28, %v3094_v12  ;;  %v378_v38 = vmul.f32 %v3200_v28, %v3097_v13 }
  0x2d   : > { %2606 = vmatmul.mubr.msk.f32.gmra.mxu0 %vm549_vm0, %v482_v46  ;;  %v379_v39 = vmul.f32 %v3200_v28, %v3102_v15  ;;  %v380_v40 = vmul.f32 %v3200_v28, %v3114_v21  ;;  %v381_v41 = vmul.f32 %v3200_v28, %v3117_v22  ;;  %v382_v43 = vmul.f32 %v3200_v28, %v3127_v30 }
  0x2e   : > { %2608 = vmatprep.mubr.msk.f32.mxu0 %vm549_vm0, %v483_v48  ;;  %v364_v45 = vmul.f32 %v3180_v2, %v3114_v21  ;;  %v3229_v46 = vadd.f32 %v3107_v16, %v376_v36  ;;  %v3232_v47 = vadd.f32 %v3107_v16, %v377_v37  ;;  %v3235_v48 = vadd.f32 %v3107_v16, %v378_v38 }
  0x2f   : > { %v3238_v49 = vadd.f32 %v3107_v16, %v379_v39  ;;  %v3241_v50 = vadd.f32 %v3107_v16, %v380_v40  ;;  %v3244_v54 = vadd.f32 %v3107_v16, %v381_v41  ;;  %v431_v58 = vadd.f32 %v3107_v16, %v361_v31 }
  0x30   : > { %v432_v59 = vadd.f32 %v3107_v16, %v362_v32  ;;  %v365_v60 = vmul.f32 %v3180_v2, %v3117_v22  ;;  %v366_v61 = vmul.f32 %v3180_v2, %v3127_v30  ;;  %v494_v63 = vmax.f32 %v430_v34, 0.0 }
  0x31   : > { %2609 = vmatmul.mubr.msk.f32.gmra.mxu0 %vm549_vm0, %v484_v57  ;;  %v3247_v57 = vadd.f32 %v3107_v16, %v382_v43  ;;  %v433_v0 = vadd.f32 %v3107_v16, %v363_v33  ;;  %v338_v1 = vrot.slane %v322_v24, %v3083_v8  ;;  %v383_v3 = vmul.f32 %v3200_v28, %v3131_v35 }
  0x32   : > { %2611 = vmatprep.mubr.msk.f32.mxu0 %vm549_vm0, %v485_v62  ;;  %v493_v62 = vmax.f32 %v429_v29, 0.0  ;;  %v385_v5 = vmul.f32 %v3200_v28, %v3144_v44  ;;  %v386_v6 = vmul.f32 %v3200_v28, %v3153_v51  ;;  %v388_v8 = vmul.f32 %v3200_v28, %v3159_v53 }
  0x33   : > { %v389_v17 = vmul.f32 %v3200_v28, %v3164_v55  ;;  %v390_v14 = vmul.f32 %v3200_v28, %v3167_v56  ;;  %v3276_v18 = vadd.f32 %v3107_v16, %v383_v3  ;;  %v495_v29 = vmax.f32 %v431_v58, 0.0 }
  0x34   : > { %v3282_v10 = vadd.f32 %v3107_v16, %v385_v5  ;;  %v3292_v24 = vadd.f32 %v3107_v16, %v388_v8  ;;  %v434_v31 = vadd.f32 %v3107_v16, %v364_v45  ;;  %v435_v32 = vadd.f32 %v3107_v16, %v365_v60 }
  0x35   : > { %2612 = vmatmul.mubr.msk.f32.gmra.mxu0 %vm549_vm0, %v486_v4  ;;  %v384_v4 = vmul.f32 %v3200_v28, %v3141_v42  ;;  %v496_v33 = vmax.f32 %v432_v59, 0.0  ;;  %v497_v34 = vmax.f32 %v433_v0, 0.0  ;;  %v367_v36 = vmul.f32 %v3180_v2, %v3131_v35 }
  0x36   : > { %2614 = vmatprep.mubr.msk.f32.mxu0 %vm549_vm0, %v487_v7  ;;  %v387_v7 = vmul.f32 %v3200_v28, %v3156_v52  ;;  %v368_v37 = vmul.f32 %v3180_v2, %v3141_v42  ;;  %v391_v38 = vmul.f32 %v338_v1, %v3086_v9  ;;  %v392_v39 = vmul.f32 %v338_v1, %v3091_v11 }
  0x37   : > { %v3279_v19 = vadd.f32 %v3107_v16, %v384_v4  ;;  %v393_v40 = vmul.f32 %v338_v1, %v3094_v12  ;;  %v394_v41 = vmul.f32 %v338_v1, %v3097_v13  ;;  %v395_v43 = vmul.f32 %v338_v1, %v3102_v15 }
  0x38   : > { %v396_v45 = vmul.f32 %v338_v1, %v3114_v21  ;;  %v397_v58 = vmul.f32 %v338_v1, %v3117_v22  ;;  %v398_v59 = vmul.f32 %v338_v1, %v3127_v30  ;;  %v3319_v60 = vadd.f32 %v3107_v16, %v391_v38 }
  0x39   : > { %2615 = vmatmul.mubr.msk.f32.gmra.mxu0 %vm549_vm0, %v488_v20  ;;  %v3285_v20 = vadd.f32 %v3107_v16, %v386_v6  ;;  %v3322_v11 = vadd.f32 %v3107_v16, %v392_v39  ;;  %v3325_v12 = vadd.f32 %v3107_v16, %v393_v40  ;;  %v3328_v13 = vadd.f32 %v3107_v16, %v394_v41 }
  0x3a   : > { %2617 = vmatprep.mubr.msk.f32.mxu0 %vm549_vm0, %v489_v23  ;;  %v3289_v23 = vadd.f32 %v3107_v16, %v387_v7  ;;  %v3331_v15 = vadd.f32 %v3107_v16, %v395_v43  ;;  %v3334_v21 = vadd.f32 %v3107_v16, %v396_v45  ;;  %v3337_v22 = vadd.f32 %v3107_v16, %v397_v58 }
  0x3b   : > { %v3340_v30 = vadd.f32 %v3107_v16, %v398_v59  ;;  %v437_v0 = vadd.f32 %v3107_v16, %v367_v36  ;;  %v438_v3 = vadd.f32 %v3107_v16, %v368_v37  ;;  %v369_v4 = vmul.f32 %v3180_v2, %v3144_v44 }
  0x3c   : > { %v370_v5 = vmul.f32 %v3180_v2, %v3153_v51  ;;  %v399_v6 = vmul.f32 %v338_v1, %v3131_v35  ;;  %v400_v7 = vmul.f32 %v338_v1, %v3141_v42  ;;  %v401_v8 = vmul.f32 %v338_v1, %v3144_v44 }
  0x3d   : > { %2618 = vmatmul.mubr.msk.f32.gmra.mxu0 %vm549_vm0, %v490_v25  ;;  %v3295_v25 = vadd.f32 %v3107_v16, %v389_v17  ;;  %v402_v17 = vmul.f32 %v338_v1, %v3153_v51  ;;  %v501_v36 = vmax.f32 %v437_v0, 0.0  ;;  %v439_v37 = vadd.f32 %v3107_v16, %v369_v4 }
  0x3e   : > { %2620 = vmatprep.mubr.msk.f32.mxu0 %vm549_vm0, %v491_v26  ;;  %v3298_v26 = vadd.f32 %v3107_v16, %v390_v14  ;;  %v403_v14 = vmul.f32 %v338_v1, %v3156_v52  ;;  %v3365_v35 = vadd.f32 %v3107_v16, %v401_v8  ;;  %v371_v38 = vmul.f32 %v3180_v2, %v3156_v52 }
  0x3f   : > { %v3368_v42 = vadd.f32 %v3107_v16, %v402_v17  ;;  %v502_v39 = vmax.f32 %v438_v3, 0.0  ;;  %v440_v40 = vadd.f32 %v3107_v16, %v370_v5  ;;  %v372_v41 = vmul.f32 %v3180_v2, %v3159_v53 }
  0x40   : > { %v3372_v44 = vadd.f32 %v3107_v16, %v403_v14  ;;  %v503_v43 = vmax.f32 %v439_v37, 0.0  ;;  %v441_v45 = vadd.f32 %v3107_v16, %v371_v38  ;;  %v373_v58 = vmul.f32 %v3180_v2, %v3164_v55 }
  0x41   : > { %2621 = vmatmul.mubr.msk.f32.gmra.mxu0 %vm549_vm0, %v492_v27  ;;  %v436_v27 = vadd.f32 %v3107_v16, %v366_v61  ;;  %v498_v61 = vmax.f32 %v434_v31, 0.0  ;;  %v405_v31 = vmul.f32 %v338_v1, %v3164_v55  ;;  %v504_v59 = vmax.f32 %v440_v40, 0.0 }
  0x42   : > { %2623 = vmatprep.mubr.msk.f32.mxu0 %vm549_vm0, %v493_v62  ;;  %v499_v62 = vmax.f32 %v435_v32, 0.0  ;;  %v406_v32 = vmul.f32 %v338_v1, %v3167_v56  ;;  %v442_v52 = vadd.f32 %v3107_v16, %v372_v41  ;;  %v512_v5 = vmax.f32 %v3235_v48, 0.0 }
  0x43   : > { %v516_v48 = vmax.f32 %v3247_v57, 0.0  ;;  %v521_v57 = vmax.f32 %v3289_v23, 0.0  ;;  %v526_v23 = vmax.f32 %v3322_v11, 0.0  ;;  %v531_v11 = vmax.f32 %v3337_v22, 0.0 }
  0x44   : > { %v506_v0 = vmax.f32 %v442_v52, 0.0  ;;  %v536_v22 = vmax.f32 %v3368_v42, 0.0 }
  0x45   : > { %2624 = vmatmul.mubr.msk.f32.gmra.mxu0 %vm549_vm0, %v494_v63  ;;  %v500_v63 = vmax.f32 %v436_v27, 0.0  ;;  %v3359_v27 = vadd.f32 %v3107_v16, %v399_v6  ;;  %v514_v6 = vmax.f32 %v3241_v50, 0.0  ;;  %v518_v50 = vmax.f32 %v3279_v19, 0.0 }
  0x46   : > { %2626 = vmatprep.mubr.msk.f32.mxu0 %vm549_vm0, %v495_v29  ;;  %v404_v29 = vmul.f32 %v338_v1, %v3159_v53  ;;  %v3378_v1 = vadd.f32 %v3107_v16, %v405_v31  ;;  %v443_v53 = vadd.f32 %v3107_v16, %v373_v58  ;;  %v523_v19 = vmax.f32 %v3295_v25, 0.0 }
  0x47   : > { %v528_v25 = vmax.f32 %v3328_v13, 0.0  ;;  %v533_v13 = vmax.f32 %v3359_v27, 0.0 }
  0x48   : > { %v3375_v51 = vadd.f32 %v3107_v16, %v404_v29  ;;  %v507_v3 = vmax.f32 %v443_v53, 0.0  ;;  %v539_v17 = vmax.f32 %v3378_v1, 0.0  ;;  %v3479_v29 = vld [vmem:[%s3946_s4] ss:$0 sm:$0xff] }
  0x49   : > { %2627 = vmatmul.mubr.msk.f32.gmra.mxu0 %vm549_vm0, %v496_v33  ;;  %v3362_v33 = vadd.f32 %v3107_v16, %v400_v7  ;;  %v520_v7 = vmax.f32 %v3285_v20, 0.0  ;;  %v525_v20 = vmax.f32 %v3319_v60, 0.0  ;;  %v530_v60 = vmax.f32 %v3334_v21, 0.0 }
  0x4a   : > { %2629 = vmatprep.mubr.msk.f32.mxu0 %vm549_vm0, %v497_v34  ;;  %v3381_v34 = vadd.f32 %v3107_v16, %v406_v32  ;;  %v535_v21 = vmax.f32 %v3365_v35, 0.0  ;;  %v538_v8 = vmax.f32 %v3375_v51, 0.0 }
  0x4c   : > { %v540_v14 = vmax.f32 %v3381_v34, 0.0 }
  0x4d   : > { %2630 = vmatmul.mubr.msk.f32.gmra.mxu0 %vm549_vm0, %v498_v61  ;;  %v374_v61 = vmul.f32 %v3180_v2, %v3167_v56 }
  0x4e   : > { %2632 = vmatprep.mubr.msk.f32.mxu0 %vm549_vm0, %v499_v62  ;;  %v505_v62 = vmax.f32 %v441_v45, 0.0 }
  0x4f   : > { %v444_v55 = vadd.f32 %v3107_v16, %v374_v61 }
  0x51   : > { %2633 = vmatmul.mubr.msk.f32.gmra.mxu0 %vm549_vm0, %v500_v63  ;;  %v375_v63 = vmul.f32 %v3200_v28, %v3086_v9  ;;  %v508_v56 = vmax.f32 %v444_v55, 0.0  ;;  %v510_v9 = vmax.f32 %v3229_v46, 0.0  ;;  %v511_v28 = vmax.f32 %v3232_v47, 0.0  ;;  %v1191_v47 = vld [vmem:[%s3947_s5] sm:$0xff] }
  0x52   : > { %2635 = vmatprep.mubr.msk.f32.mxu0 %vm549_vm0, %v501_v36  ;;  %v515_v46 = vmax.f32 %v3244_v54, 0.0  ;;  %2695 = vmatprep.subr.mxu1 %v1191_v47  ;;  %v519_v54 = vmax.f32 %v3282_v10, 0.0  ;;  %v524_v10 = vmax.f32 %v3298_v26, 0.0  ;;  %v529_v26 = vmax.f32 %v3331_v15, 0.0 }
  0x53   : > { %v445_v4 = vadd.f32 %v3107_v16, %v375_v63  ;;  %v513_v16 = vmax.f32 %v3238_v49, 0.0  ;;  %2696 = vmatpush3.msra.mxu1 %v1191_v47  ;;  %v517_v49 = vmax.f32 %v3276_v18, 0.0  ;;  %v522_v18 = vmax.f32 %v3292_v24, 0.0 }
  0x54   : > { %v527_v24 = vmax.f32 %v3325_v12, 0.0  ;;  %v532_v12 = vmax.f32 %v3340_v30, 0.0  ;;  %v534_v15 = vmax.f32 %v3362_v33, 0.0  ;;  %v537_v30 = vmax.f32 %v3372_v44, 0.0 }
  0x55   : > { %2636 = vmatmul.mubr.msk.f32.gmra.mxu0 %vm549_vm0, %v502_v39  ;;  %v509_v2 = vmax.f32 %v445_v4, 0.0 }
  0x56   : > { %2638 = vmatprep.mubr.msk.f32.mxu0 %vm549_vm0, %v503_v43 }
  0x59   : > { %2639 = vmatmul.mubr.msk.f32.gmra.mxu0 %vm549_vm0, %v504_v59 }
  0x5a   : > { %2641 = vmatprep.mubr.msk.f32.mxu0 %vm549_vm0, %v505_v62 }
  0x5d   : > { %2642 = vmatmul.mubr.msk.f32.gmra.mxu0 %vm549_vm0, %v506_v0 }
  0x5e   : > { %2644 = vmatprep.mubr.msk.f32.mxu0 %vm549_vm0, %v507_v3 }
  0x61   : > { %2645 = vmatmul.mubr.msk.f32.gmra.mxu0 %vm549_vm0, %v508_v56 }
  0x62   : > { %2647 = vmatprep.mubr.msk.f32.mxu0 %vm549_vm0, %v509_v2 }
  0x65   : > { %2648 = vmatmul.mubr.msk.f32.gmra.mxu0 %vm549_vm0, %v510_v9 }
  0x66   : > { %2650 = vmatprep.mubr.msk.f32.mxu0 %vm549_vm0, %v511_v28 }
  0x69   : > { %2651 = vmatmul.mubr.msk.f32.gmra.mxu0 %vm549_vm0, %v512_v5 }
  0x6a   : > { %2653 = vmatprep.mubr.msk.f32.mxu0 %vm549_vm0, %v513_v16 }
  0x6d   : > { %2654 = vmatmul.mubr.msk.f32.gmra.mxu0 %vm549_vm0, %v514_v6 }
  0x6e   : > { %2656 = vmatprep.mubr.msk.f32.mxu0 %vm549_vm0, %v515_v46 }
  0x71   : > { %2657 = vmatmul.mubr.msk.f32.gmra.mxu0 %vm549_vm0, %v516_v48 }
  0x72   : > { %2659 = vmatprep.mubr.msk.f32.mxu0 %vm549_vm0, %v517_v49 }
  0x75   : > { %2660 = vmatmul.mubr.msk.f32.gmra.mxu0 %vm549_vm0, %v518_v50 }
  0x76   : > { %2662 = vmatprep.mubr.msk.f32.mxu0 %vm549_vm0, %v519_v54 }
  0x79   : > { %2663 = vmatmul.mubr.msk.f32.gmra.mxu0 %vm549_vm0, %v520_v7 }
  0x7a   : > { %2665 = vmatprep.mubr.msk.f32.mxu0 %vm549_vm0, %v521_v57 }
  0x7d   : > { %2666 = vmatmul.mubr.msk.f32.gmra.mxu0 %vm549_vm0, %v522_v18 }
  0x7e   : > { %2668 = vmatprep.mubr.msk.f32.mxu0 %vm549_vm0, %v523_v19 }
  0x81   : > { %2669 = vmatmul.mubr.msk.f32.gmra.mxu0 %vm549_vm0, %v524_v10 }
  0x82   : > { %2671 = vmatprep.mubr.msk.f32.mxu0 %vm549_vm0, %v525_v20 }
  0x85   : > { %2672 = vmatmul.mubr.msk.f32.gmra.mxu0 %vm549_vm0, %v526_v23 }
  0x86   : > { %2674 = vmatprep.mubr.msk.f32.mxu0 %vm549_vm0, %v527_v24 }
  0x89   : > { %2675 = vmatmul.mubr.msk.f32.gmra.mxu0 %vm549_vm0, %v528_v25 }
  0x8a   : > { %2677 = vmatprep.mubr.msk.f32.mxu0 %vm549_vm0, %v529_v26 }
  0x8d   : > { %2678 = vmatmul.mubr.msk.f32.gmra.mxu0 %vm549_vm0, %v530_v60 }
  0x8e   : > { %2680 = vmatprep.mubr.msk.f32.mxu0 %vm549_vm0, %v531_v11 }
  0x91   : > { %2681 = vmatmul.mubr.msk.f32.gmra.mxu0 %vm549_vm0, %v532_v12 }
  0x92   : > { %2683 = vmatprep.mubr.msk.f32.mxu0 %vm549_vm0, %v533_v13 }
  0x95   : > { %2684 = vmatmul.mubr.msk.f32.gmra.mxu0 %vm549_vm0, %v534_v15 }
  0x96   : > { %2686 = vmatprep.mubr.msk.f32.mxu0 %vm549_vm0, %v535_v21 }
  0x99   : > { %2687 = vmatmul.mubr.msk.f32.gmra.mxu0 %vm549_vm0, %v536_v22 }
  0x9a   : > { %2689 = vmatprep.mubr.msk.f32.mxu0 %vm549_vm0, %v537_v30 }
  0x9d   : > { %2690 = vmatmul.mubr.msk.f32.gmra.mxu0 %vm549_vm0, %v538_v8 }
  0x9e   : > { %2692 = vmatprep.mubr.msk.f32.mxu0 %vm549_vm0, %v539_v17 }
  0xa1   : > { %2693 = vmatmul.mubr.msk.f32.gmra.mxu0 %vm549_vm0, %v540_v14 }
  0xe5   : > { %v2601_v31 = vpop.f32.mrf.mxu0 }
  0xe6   : > { %v814_v32 = vadd.f32 %v2601_v31, %v3479_v29 }
  0xe7   : > { %v808_v27 = vpop.f32.mrf.mxu0 }
  0xe8   : > { %v809_v33 = vadd.f32 %v3479_v29, %v808_v27  ;;  %v1128_v44 = vmax.f32 %v814_v32, 0.0 }
  0xe9   : > { %v2604_v35 = vpop.f32.mrf.mxu0 }
  0xea   : > { %v1127_v42 = vmax.f32 %v809_v33, 0.0  ;;  %v824_v51 = vadd.f32 %v2604_v35, %v3479_v29 }
  0xeb   : > { %v818_v1 = vpop.f32.mrf.mxu0 }
  0xec   : > { %v819_v34 = vadd.f32 %v3479_v29, %v818_v1  ;;  %2697 = vmatprep.mubr.msk.f32.mxu1 %vm549_vm0, %v1127_v42  ;;  %v1130_v38 = vmax.f32 %v824_v51, 0.0 }
  0xed   : > { %v2607_v36 = vpop.f32.mrf.mxu0  ;;  %2698 = vmatmul.mubr.msk.f32.vlgmr.msra.gmra.mxu1 %vm549_vm0, %v1128_v44 }
  0xee   : > { %v1129_v37 = vmax.f32 %v819_v34, 0.0  ;;  %v834_v39 = vadd.f32 %v2607_v36, %v3479_v29 }
  0xef   : > { %v828_v40 = vpop.f32.mrf.mxu0 }
  0xf0   : > { %v829_v41 = vadd.f32 %v3479_v29, %v828_v40  ;;  %2700 = vmatprep.mubr.msk.f32.mxu1 %vm549_vm0, %v1129_v37  ;;  %v1132_v58 = vmax.f32 %v834_v39, 0.0 }
  0xf1   : > { %v2610_v43 = vpop.f32.mrf.mxu0  ;;  %2701 = vmatmul.mubr.msk.f32.gmra.mxu1 %vm549_vm0, %v1130_v38 }
  0xf2   : > { %v1131_v45 = vmax.f32 %v829_v41, 0.0  ;;  %v844_v59 = vadd.f32 %v2610_v43, %v3479_v29 }
  0xf3   : > { %v838_v52 = vpop.f32.mrf.mxu0 }
  0xf4   : > { %v839_v61 = vadd.f32 %v3479_v29, %v838_v52  ;;  %2703 = vmatprep.mubr.msk.f32.mxu1 %vm549_vm0, %v1131_v45  ;;  %v1134_v63 = vmax.f32 %v844_v59, 0.0 }
  0xf5   : > { %v2613_v62 = vpop.f32.mrf.mxu0  ;;  %2704 = vmatmul.mubr.msk.f32.gmra.mxu1 %vm549_vm0, %v1132_v58 }
  0xf6   : > { %v1133_v53 = vmax.f32 %v839_v61, 0.0  ;;  %v854_v0 = vadd.f32 %v2613_v62, %v3479_v29 }
  0xf7   : > { %v848_v55 = vpop.f32.mrf.mxu0 }
  0xf8   : > { %v849_v3 = vadd.f32 %v3479_v29, %v848_v55  ;;  %2706 = vmatprep.mubr.msk.f32.mxu1 %vm549_vm0, %v1133_v53  ;;  %v1136_v2 = vmax.f32 %v854_v0, 0.0 }
  0xf9   : > { %v2616_v4 = vpop.f32.mrf.mxu0  ;;  %2707 = vmatmul.mubr.msk.f32.gmra.mxu1 %vm549_vm0, %v1134_v63 }
  0xfa   : > { %v1135_v56 = vmax.f32 %v849_v3, 0.0  ;;  %v864_v9 = vadd.f32 %v2616_v4, %v3479_v29 }
  0xfb   : > { %v858_v28 = vpop.f32.mrf.mxu0 }
  0xfc   : > { %v859_v5 = vadd.f32 %v3479_v29, %v858_v28  ;;  %2709 = vmatprep.mubr.msk.f32.mxu1 %vm549_vm0, %v1135_v56  ;;  %v1138_v46 = vmax.f32 %v864_v9, 0.0 }
  0xfd   : > { %v2619_v16 = vpop.f32.mrf.mxu0  ;;  %2710 = vmatmul.mubr.msk.f32.gmra.mxu1 %vm549_vm0, %v1136_v2 }
  0xfe   : > { %v1137_v6 = vmax.f32 %v859_v5, 0.0  ;;  %v874_v47 = vadd.f32 %v2619_v16, %v3479_v29 }
  0xff   : > { %v868_v48 = vpop.f32.mrf.mxu0 }
 0x100   : > { %v869_v49 = vadd.f32 %v3479_v29, %v868_v48  ;;  %2712 = vmatprep.mubr.msk.f32.mxu1 %vm549_vm0, %v1137_v6  ;;  %v1140_v7 = vmax.f32 %v874_v47, 0.0 }
 0x101   : > { %v2622_v50 = vpop.f32.mrf.mxu0  ;;  %2713 = vmatmul.mubr.msk.f32.gmra.mxu1 %vm549_vm0, %v1138_v46 }
 0x102   : > { %v1139_v54 = vmax.f32 %v869_v49, 0.0  ;;  %v884_v57 = vadd.f32 %v2622_v50, %v3479_v29 }
 0x103   : > { %v878_v18 = vpop.f32.mrf.mxu0 }
 0x104   : > { %v879_v19 = vadd.f32 %v3479_v29, %v878_v18  ;;  %2715 = vmatprep.mubr.msk.f32.mxu1 %vm549_vm0, %v1139_v54  ;;  %v1142_v23 = vmax.f32 %v884_v57, 0.0 }
 0x105   : > { %v2625_v10 = vpop.f32.mrf.mxu0  ;;  %2716 = vmatmul.mubr.msk.f32.gmra.mxu1 %vm549_vm0, %v1140_v7 }
 0x106   : > { %v1141_v20 = vmax.f32 %v879_v19, 0.0  ;;  %v894_v24 = vadd.f32 %v2625_v10, %v3479_v29 }
 0x107   : > { %v888_v25 = vpop.f32.mrf.mxu0 }
 0x108   : > { %v889_v26 = vadd.f32 %v3479_v29, %v888_v25  ;;  %2718 = vmatprep.mubr.msk.f32.mxu1 %vm549_vm0, %v1141_v20  ;;  %v1144_v12 = vmax.f32 %v894_v24, 0.0 }
 0x109   : > { %v2628_v60 = vpop.f32.mrf.mxu0  ;;  %2719 = vmatmul.mubr.msk.f32.gmra.mxu1 %vm549_vm0, %v1142_v23 }
 0x10a   : > { %v1143_v11 = vmax.f32 %v889_v26, 0.0  ;;  %v904_v13 = vadd.f32 %v2628_v60, %v3479_v29 }
 0x10b   : > { %v898_v15 = vpop.f32.mrf.mxu0 }
 0x10c   : > { %v899_v21 = vadd.f32 %v3479_v29, %v898_v15  ;;  %2721 = vmatprep.mubr.msk.f32.mxu1 %vm549_vm0, %v1143_v11  ;;  %v1146_v8 = vmax.f32 %v904_v13, 0.0 }
 0x10d   : > { %v2631_v22 = vpop.f32.mrf.mxu0  ;;  %2722 = vmatmul.mubr.msk.f32.gmra.mxu1 %vm549_vm0, %v1144_v12 }
 0x10e   : > { %v1145_v30 = vmax.f32 %v899_v21, 0.0  ;;  %v914_v17 = vadd.f32 %v2631_v22, %v3479_v29 }
 0x10f   : > { %v908_v14 = vpop.f32.mrf.mxu0 }
 0x110   : > { %v909_v31 = vadd.f32 %v3479_v29, %v908_v14  ;;  %2724 = vmatprep.mubr.msk.f32.mxu1 %vm549_vm0, %v1145_v30  ;;  %v1148_v33 = vmax.f32 %v914_v17, 0.0 }
 0x111   : > { %v2634_v32 = vpop.f32.mrf.mxu0  ;;  %2725 = vmatmul.mubr.msk.f32.gmra.mxu1 %vm549_vm0, %v1146_v8 }
 0x112   : > { %v1147_v27 = vmax.f32 %v909_v31, 0.0  ;;  %v924_v35 = vadd.f32 %v2634_v32, %v3479_v29 }
 0x113   : > { %v918_v42 = vpop.f32.mrf.mxu0 }
 0x114   : > { %v919_v44 = vadd.f32 %v3479_v29, %v918_v42  ;;  %2727 = vmatprep.mubr.msk.f32.mxu1 %vm549_vm0, %v1147_v27  ;;  %v1150_v34 = vmax.f32 %v924_v35, 0.0 }
 0x115   : > { %v2637_v51 = vpop.f32.mrf.mxu0  ;;  %2728 = vmatmul.mubr.msk.f32.gmra.mxu1 %vm549_vm0, %v1148_v33 }
 0x116   : > { %v1149_v1 = vmax.f32 %v919_v44, 0.0  ;;  %v934_v36 = vadd.f32 %v2637_v51, %v3479_v29 }
 0x117   : > { %v928_v37 = vpop.f32.mrf.mxu0 }
 0x118   : > { %v929_v38 = vadd.f32 %v3479_v29, %v928_v37  ;;  %2730 = vmatprep.mubr.msk.f32.mxu1 %vm549_vm0, %v1149_v1  ;;  %v1152_v41 = vmax.f32 %v934_v36, 0.0 }
 0x119   : > { %v2640_v39 = vpop.f32.mrf.mxu0  ;;  %2731 = vmatmul.mubr.msk.f32.gmra.mxu1 %vm549_vm0, %v1150_v34 }
 0x11a   : > { %v1151_v40 = vmax.f32 %v929_v38, 0.0  ;;  %v944_v43 = vadd.f32 %v2640_v39, %v3479_v29 }
 0x11b   : > { %v938_v45 = vpop.f32.mrf.mxu0 }
 0x11c   : > { %v939_v58 = vadd.f32 %v3479_v29, %v938_v45  ;;  %2733 = vmatprep.mubr.msk.f32.mxu1 %vm549_vm0, %v1151_v40  ;;  %v1154_v61 = vmax.f32 %v944_v43, 0.0 }
 0x11d   : > { %v2643_v59 = vpop.f32.mrf.mxu0  ;;  %2734 = vmatmul.mubr.msk.f32.gmra.mxu1 %vm549_vm0, %v1152_v41 }
 0x11e   : > { %v1153_v52 = vmax.f32 %v939_v58, 0.0  ;;  %v954_v62 = vadd.f32 %v2643_v59, %v3479_v29 }
 0x11f   : > { %v948_v53 = vpop.f32.mrf.mxu0 }
 0x120   : > { %v949_v63 = vadd.f32 %v3479_v29, %v948_v53  ;;  %2736 = vmatprep.mubr.msk.f32.mxu1 %vm549_vm0, %v1153_v52  ;;  %v1156_v3 = vmax.f32 %v954_v62, 0.0 }
 0x121   : > { %v2646_v0 = vpop.f32.mrf.mxu0  ;;  %2737 = vmatmul.mubr.msk.f32.gmra.mxu1 %vm549_vm0, %v1154_v61 }
 0x122   : > { %v1155_v55 = vmax.f32 %v949_v63, 0.0  ;;  %v964_v4 = vadd.f32 %v2646_v0, %v3479_v29 }
 0x123   : > { %v958_v56 = vpop.f32.mrf.mxu0 }
 0x124   : > { %v959_v2 = vadd.f32 %v3479_v29, %v958_v56  ;;  %2739 = vmatprep.mubr.msk.f32.mxu1 %vm549_vm0, %v1155_v55  ;;  %v1158_v5 = vmax.f32 %v964_v4, 0.0 }
 0x125   : > { %v2649_v9 = vpop.f32.mrf.mxu0  ;;  %2740 = vmatmul.mubr.msk.f32.gmra.mxu1 %vm549_vm0, %v1156_v3 }
 0x126   : > { %v1157_v28 = vmax.f32 %v959_v2, 0.0  ;;  %v974_v16 = vadd.f32 %v2649_v9, %v3479_v29 }
 0x127   : > { %v968_v6 = vpop.f32.mrf.mxu0 }
 0x128   : > { %v969_v46 = vadd.f32 %v3479_v29, %v968_v6  ;;  %2742 = vmatprep.mubr.msk.f32.mxu1 %vm549_vm0, %v1157_v28  ;;  %v1160_v49 = vmax.f32 %v974_v16, 0.0 }
 0x129   : > { %v2652_v47 = vpop.f32.mrf.mxu0  ;;  %2743 = vmatmul.mubr.msk.f32.gmra.mxu1 %vm549_vm0, %v1158_v5 }
 0x12a   : > { %v1159_v48 = vmax.f32 %v969_v46, 0.0  ;;  %v984_v50 = vadd.f32 %v2652_v47, %v3479_v29 }
 0x12b   : > { %v978_v54 = vpop.f32.mrf.mxu0 }
 0x12c   : > { %v979_v7 = vadd.f32 %v3479_v29, %v978_v54  ;;  %2745 = vmatprep.mubr.msk.f32.mxu1 %vm549_vm0, %v1159_v48  ;;  %v1162_v19 = vmax.f32 %v984_v50, 0.0 }
 0x12d   : > { %v2655_v57 = vpop.f32.mrf.mxu0  ;;  %2746 = vmatmul.mubr.msk.f32.gmra.mxu1 %vm549_vm0, %v1160_v49 }
 0x12e   : > { %v1161_v18 = vmax.f32 %v979_v7, 0.0  ;;  %v994_v10 = vadd.f32 %v2655_v57, %v3479_v29 }
 0x12f   : > { %v988_v20 = vpop.f32.mrf.mxu0 }
 0x130   : > { %v989_v23 = vadd.f32 %v3479_v29, %v988_v20  ;;  %2748 = vmatprep.mubr.msk.f32.mxu1 %vm549_vm0, %v1161_v18  ;;  %v1164_v26 = vmax.f32 %v994_v10, 0.0 }
 0x131   : > { %v2658_v24 = vpop.f32.mrf.mxu0  ;;  %2749 = vmatmul.mubr.msk.f32.gmra.mxu1 %vm549_vm0, %v1162_v19 }
 0x132   : > { %v1163_v25 = vmax.f32 %v989_v23, 0.0  ;;  %v1004_v60 = vadd.f32 %v2658_v24, %v3479_v29 }
 0x133   : > { %v998_v11 = vpop.f32.mrf.mxu0 }
 0x134   : > { %v999_v12 = vadd.f32 %v3479_v29, %v998_v11  ;;  %2751 = vmatprep.mubr.msk.f32.mxu1 %vm549_vm0, %v1163_v25  ;;  %v1166_v21 = vmax.f32 %v1004_v60, 0.0 }
 0x135   : > { %v2661_v13 = vpop.f32.mrf.mxu0  ;;  %2752 = vmatmul.mubr.msk.f32.gmra.mxu1 %vm549_vm0, %v1164_v26 }
 0x136   : > { %v1165_v15 = vmax.f32 %v999_v12, 0.0  ;;  %v1014_v22 = vadd.f32 %v2661_v13, %v3479_v29 }
 0x137   : > { %v1008_v30 = vpop.f32.mrf.mxu0 }
 0x138   : > { %v1009_v8 = vadd.f32 %v3479_v29, %v1008_v30  ;;  %2754 = vmatprep.mubr.msk.f32.mxu1 %vm549_vm0, %v1165_v15  ;;  %v1168_v31 = vmax.f32 %v1014_v22, 0.0 }
 0x139   : > { %v2664_v17 = vpop.f32.mrf.mxu0  ;;  %2755 = vmatmul.mubr.msk.f32.gmra.mxu1 %vm549_vm0, %v1166_v21 }
 0x13a   : > { %v1167_v14 = vmax.f32 %v1009_v8, 0.0  ;;  %v1024_v32 = vadd.f32 %v2664_v17, %v3479_v29 }
 0x13b   : > { %v1018_v27 = vpop.f32.mrf.mxu0 }
 0x13c   : > { %v1019_v33 = vadd.f32 %v3479_v29, %v1018_v27  ;;  %2757 = vmatprep.mubr.msk.f32.mxu1 %vm549_vm0, %v1167_v14  ;;  %v1170_v44 = vmax.f32 %v1024_v32, 0.0 }
 0x13d   : > { %v2667_v35 = vpop.f32.mrf.mxu0  ;;  %2758 = vmatmul.mubr.msk.f32.gmra.mxu1 %vm549_vm0, %v1168_v31 }
 0x13e   : > { %v1169_v42 = vmax.f32 %v1019_v33, 0.0  ;;  %v1034_v51 = vadd.f32 %v2667_v35, %v3479_v29 }
 0x13f   : > { %v1028_v1 = vpop.f32.mrf.mxu0 }
 0x140   : > { %v1029_v34 = vadd.f32 %v3479_v29, %v1028_v1  ;;  %2760 = vmatprep.mubr.msk.f32.mxu1 %vm549_vm0, %v1169_v42  ;;  %v1172_v38 = vmax.f32 %v1034_v51, 0.0 }
 0x141   : > { %v2670_v36 = vpop.f32.mrf.mxu0  ;;  %2761 = vmatmul.mubr.msk.f32.gmra.mxu1 %vm549_vm0, %v1170_v44 }
 0x142   : > { %v1171_v37 = vmax.f32 %v1029_v34, 0.0  ;;  %v1044_v39 = vadd.f32 %v2670_v36, %v3479_v29 }
 0x143   : > { %v1038_v40 = vpop.f32.mrf.mxu0 }
 0x144   : > { %v1039_v41 = vadd.f32 %v3479_v29, %v1038_v40  ;;  %2763 = vmatprep.mubr.msk.f32.mxu1 %vm549_vm0, %v1171_v37  ;;  %v1174_v58 = vmax.f32 %v1044_v39, 0.0 }
 0x145   : > { %v2673_v43 = vpop.f32.mrf.mxu0  ;;  %2764 = vmatmul.mubr.msk.f32.gmra.mxu1 %vm549_vm0, %v1172_v38 }
 0x146   : > { %v1173_v45 = vmax.f32 %v1039_v41, 0.0  ;;  %v1054_v59 = vadd.f32 %v2673_v43, %v3479_v29 }
 0x147   : > { %v1048_v52 = vpop.f32.mrf.mxu0 }
 0x148   : > { %v1049_v61 = vadd.f32 %v3479_v29, %v1048_v52  ;;  %2766 = vmatprep.mubr.msk.f32.mxu1 %vm549_vm0, %v1173_v45  ;;  %v1176_v63 = vmax.f32 %v1054_v59, 0.0 }
 0x149   : > { %v2676_v62 = vpop.f32.mrf.mxu0  ;;  %2767 = vmatmul.mubr.msk.f32.gmra.mxu1 %vm549_vm0, %v1174_v58  ;;  %v3644_v58 = vld [vmem:[%s3948_s6] ss:$0 sm:$0xff] }
 0x14a   : > { %v1175_v53 = vmax.f32 %v1049_v61, 0.0  ;;  %v1064_v0 = vadd.f32 %v2676_v62, %v3479_v29 }
 0x14b   : > { %v1058_v55 = vpop.f32.mrf.mxu0 }
 0x14c   : > { %v1059_v3 = vadd.f32 %v3479_v29, %v1058_v55  ;;  %2769 = vmatprep.mubr.msk.f32.mxu1 %vm549_vm0, %v1175_v53  ;;  %v1178_v2 = vmax.f32 %v1064_v0, 0.0 }
 0x14d   : > { %v2679_v4 = vpop.f32.mrf.mxu0  ;;  %2770 = vmatmul.mubr.msk.f32.gmra.mxu1 %vm549_vm0, %v1176_v63 }
 0x14e   : > { %v1177_v56 = vmax.f32 %v1059_v3, 0.0  ;;  %v1074_v9 = vadd.f32 %v2679_v4, %v3479_v29 }
 0x14f   : > { %v1068_v28 = vpop.f32.mrf.mxu0 }
 0x150   : > { %v1069_v5 = vadd.f32 %v3479_v29, %v1068_v28  ;;  %2772 = vmatprep.mubr.msk.f32.mxu1 %vm549_vm0, %v1177_v56  ;;  %v1180_v46 = vmax.f32 %v1074_v9, 0.0 }
 0x151   : > { %v2682_v16 = vpop.f32.mrf.mxu0  ;;  %2773 = vmatmul.mubr.msk.f32.gmra.mxu1 %vm549_vm0, %v1178_v2 }
 0x152   : > { %v1179_v6 = vmax.f32 %v1069_v5, 0.0  ;;  %v1084_v47 = vadd.f32 %v2682_v16, %v3479_v29 }
 0x153   : > { %v1078_v48 = vpop.f32.mrf.mxu0 }
 0x154   : > { %v1079_v49 = vadd.f32 %v3479_v29, %v1078_v48  ;;  %2775 = vmatprep.mubr.msk.f32.mxu1 %vm549_vm0, %v1179_v6  ;;  %v1182_v7 = vmax.f32 %v1084_v47, 0.0 }
 0x155   : > { %v2685_v50 = vpop.f32.mrf.mxu0  ;;  %2776 = vmatmul.mubr.msk.f32.gmra.mxu1 %vm549_vm0, %v1180_v46 }
 0x156   : > { %v1181_v54 = vmax.f32 %v1079_v49, 0.0  ;;  %v1094_v57 = vadd.f32 %v2685_v50, %v3479_v29 }
 0x157   : > { %v1088_v18 = vpop.f32.mrf.mxu0 }
 0x158   : > { %v1089_v19 = vadd.f32 %v3479_v29, %v1088_v18  ;;  %2778 = vmatprep.mubr.msk.f32.mxu1 %vm549_vm0, %v1181_v54  ;;  %v1184_v23 = vmax.f32 %v1094_v57, 0.0 }
 0x159   : > { %v2688_v10 = vpop.f32.mrf.mxu0  ;;  %2779 = vmatmul.mubr.msk.f32.gmra.mxu1 %vm549_vm0, %v1182_v7 }
 0x15a   : > { %v1183_v20 = vmax.f32 %v1089_v19, 0.0  ;;  %v1104_v24 = vadd.f32 %v2688_v10, %v3479_v29 }
 0x15b   : > { %v1098_v25 = vpop.f32.mrf.mxu0 }
 0x15c   : > { %v1099_v26 = vadd.f32 %v3479_v29, %v1098_v25  ;;  %2781 = vmatprep.mubr.msk.f32.mxu1 %vm549_vm0, %v1183_v20  ;;  %v1186_v12 = vmax.f32 %v1104_v24, 0.0 }
 0x15d   : > { %v2691_v60 = vpop.f32.mrf.mxu0  ;;  %2782 = vmatmul.mubr.msk.f32.gmra.mxu1 %vm549_vm0, %v1184_v23 }
 0x15e   : > { %v1185_v11 = vmax.f32 %v1099_v26, 0.0  ;;  %v1114_v13 = vadd.f32 %v2691_v60, %v3479_v29 }
 0x15f   : > { %v1108_v15 = vpop.f32.mrf.mxu0 }
 0x160   : > { %v1109_v21 = vadd.f32 %v3479_v29, %v1108_v15  ;;  %2784 = vmatprep.mubr.msk.f32.mxu1 %vm549_vm0, %v1185_v11  ;;  %v1188_v8 = vmax.f32 %v1114_v13, 0.0 }
 0x161   : > { %v2694_v22 = vpop.f32.mrf.mxu0  ;;  %2785 = vmatmul.mubr.msk.f32.gmra.mxu1 %vm549_vm0, %v1186_v12 }
 0x162   : > { %v1187_v30 = vmax.f32 %v1109_v21, 0.0  ;;  %v1124_v17 = vadd.f32 %v2694_v22, %v3479_v29 }
 0x163   : > { %v1118_v14 = vpop.f32.mrf.mxu0 }
 0x164   : > { %v1119_v31 = vadd.f32 %v3479_v29, %v1118_v14  ;;  %2787 = vmatprep.mubr.msk.f32.mxu1 %vm549_vm0, %v1187_v30  ;;  %v1190_v27 = vmax.f32 %v1124_v17, 0.0 }
 0x165   : > { %2788 = vmatmul.mubr.msk.f32.gmra.mxu1 %vm549_vm0, %v1188_v8 }
 0x166   : > { %v1189_v32 = vmax.f32 %v1119_v31, 0.0 }
 0x168   : > { %2790 = vmatprep.mubr.msk.f32.mxu1 %vm549_vm0, %v1189_v32 }
 0x169   : > { %2791 = vmatmul.mubr.msk.f32.gmra.mxu1 %vm549_vm0, %v1190_v27 }
 0x1ad   : > { %v3609_v33 = vpop.f32.mrf.mxu1 }
 0x1af   : > { %v3611_v35 = vpop.f32.mrf.mxu1 }
 0x1b1   : > { %v3613_v42 = vpop.f32.mrf.mxu1 }
 0x1b3   : > { %v3615_v44 = vpop.f32.mrf.mxu1 }
 0x1b5   : > { %v3617_v51 = vpop.f32.mrf.mxu1 }
 0x1b7   : > { %v3619_v29 = vpop.f32.mrf.mxu1 }
 0x1b9   : > { %v3621_v1 = vpop.f32.mrf.mxu1 }
 0x1bb   : > { %v3623_v34 = vpop.f32.mrf.mxu1 }
 0x1bd   : > { %v3625_v36 = vpop.f32.mrf.mxu1 }
 0x1bf   : > { %v3627_v37 = vpop.f32.mrf.mxu1 }
 0x1c1   : > { %v3629_v38 = vpop.f32.mrf.mxu1 }
 0x1c3   : > { %v3631_v39 = vpop.f32.mrf.mxu1 }
 0x1c5   : > { %v3633_v40 = vpop.f32.mrf.mxu1 }
 0x1c7   : > { %v3635_v41 = vpop.f32.mrf.mxu1 }
 0x1c9   : > { %v3637_v43 = vpop.f32.mrf.mxu1 }
 0x1cb   : > { %v3639_v45 = vpop.f32.mrf.mxu1 }
 0x1cd   : > { %v2723_v59 = vpop.f32.mrf.mxu1 }
 0x1ce   : > { %v1543_v52 = vadd.f32 %v2723_v59, %v3644_v58 }
 0x1cf   : > { %v1537_v61 = vpop.f32.mrf.mxu1 }
 0x1d0   : > { %v1538_v62 = vadd.f32 %v3644_v58, %v1537_v61  ;;  %v1793_v63 = vmax.f32 %v1543_v52, 0.0 }
 0x1d1   : > { %v2726_v53 = vpop.f32.mrf.mxu1 }
 0x1d2   : > { %v1792_v0 = vmax.f32 %v1538_v62, 0.0  ;;  %v1553_v55 = vadd.f32 %v2726_v53, %v3644_v58 }
 0x1d3   : > { %v1547_v3 = vpop.f32.mrf.mxu1 }
 0x1d4   : > { %v1548_v4 = vadd.f32 %v3644_v58, %v1547_v3  ;;  %v2836_v56 = vpack.i.bf16 %v1793_v63, %v1792_v0  ;;  %v1795_v9 = vmax.f32 %v1553_v55, 0.0 }
 0x1d5   : > { %v2729_v2 = vpop.f32.mrf.mxu1 }
 0x1d6   : > { %v1794_v28 = vmax.f32 %v1548_v4, 0.0  ;;  %v1563_v5 = vadd.f32 %v2729_v2, %v3644_v58  ;;  %2837 = vrot.lane.b32.xlu0 %v2836_v56, %s2979_s16 }
 0x1d7   : > { %v1557_v16 = vpop.f32.mrf.mxu1 }
 0x1d8   : > { %v2841_v6 = vpack.i.bf16 %v1795_v9, %v1794_v28  ;;  %v1558_v46 = vadd.f32 %v3644_v58, %v1557_v16  ;;  %v1797_v48 = vmax.f32 %v1563_v5, 0.0 }
 0x1d9   : > { %v2732_v47 = vpop.f32.mrf.mxu1 }
 0x1da   : > { %v1796_v49 = vmax.f32 %v1558_v46, 0.0  ;;  %v1573_v50 = vadd.f32 %v2732_v47, %v3644_v58  ;;  %2842 = vrot.lane.b32.xlu0 %v2841_v6, %s2979_s16 }
 0x1db   : > { %v1567_v54 = vpop.f32.mrf.mxu1 }
 0x1dc   : > { %v1568_v7 = vadd.f32 %v3644_v58, %v1567_v54  ;;  %v2846_v57 = vpack.i.bf16 %v1797_v48, %v1796_v49  ;;  %v1799_v19 = vmax.f32 %v1573_v50, 0.0 }
 0x1dd   : > { %v2735_v18 = vpop.f32.mrf.mxu1 }
 0x1de   : > { %v1798_v10 = vmax.f32 %v1568_v7, 0.0  ;;  %v1583_v20 = vadd.f32 %v2735_v18, %v3644_v58  ;;  %2847 = vrot.lane.b32.xlu1 %v2846_v57, %s2979_s16 }
 0x1df   : > { %v1577_v23 = vpop.f32.mrf.mxu1 }
 0x1e0   : > { %v2851_v24 = vpack.i.bf16 %v1799_v19, %v1798_v10  ;;  %v1578_v25 = vadd.f32 %v3644_v58, %v1577_v23  ;;  %v1801_v60 = vmax.f32 %v1583_v20, 0.0 }
 0x1e1   : > { %v2738_v26 = vpop.f32.mrf.mxu1 }
 0x1e2   : > { %v1800_v11 = vmax.f32 %v1578_v25, 0.0  ;;  %v1593_v12 = vadd.f32 %v2738_v26, %v3644_v58  ;;  %2852 = vrot.lane.b32.xlu1 %v2851_v24, %s2979_s16 }
 0x1e3   : > { %v1587_v13 = vpop.f32.mrf.mxu1 }
 0x1e4   : > { %v2856_v15 = vpack.i.bf16 %v1801_v60, %v1800_v11  ;;  %v1588_v21 = vadd.f32 %v3644_v58, %v1587_v13  ;;  %v1803_v30 = vmax.f32 %v1593_v12, 0.0 }
 0x1e5   : > { %v2741_v22 = vpop.f32.mrf.mxu1 }
 0x1e6   : > { %v1802_v8 = vmax.f32 %v1588_v21, 0.0  ;;  %v1603_v17 = vadd.f32 %v2741_v22, %v3644_v58  ;;  %2857 = vrot.lane.b32.xlu0 %v2856_v15, %s2979_s16 }
 0x1e7   : > { %v1597_v14 = vpop.f32.mrf.mxu1 }
 0x1e8   : > { %v2861_v31 = vpack.i.bf16 %v1803_v30, %v1802_v8  ;;  %v1598_v32 = vadd.f32 %v3644_v58, %v1597_v14  ;;  %v1805_v59 = vmax.f32 %v1603_v17, 0.0 }
 0x1e9   : > { %v2744_v27 = vpop.f32.mrf.mxu1 }
 0x1ea   : > { %v1804_v52 = vmax.f32 %v1598_v32, 0.0  ;;  %v1613_v61 = vadd.f32 %v2744_v27, %v3644_v58  ;;  %2862 = vrot.lane.b32.xlu1 %v2861_v31, %s2979_s16 }
 0x1eb   : > { %v1607_v62 = vpop.f32.mrf.mxu1 }
 0x1ec   : > { %v2866_v53 = vpack.i.bf16 %v1805_v59, %v1804_v52  ;;  %v1608_v63 = vadd.f32 %v3644_v58, %v1607_v62  ;;  %v1807_v55 = vmax.f32 %v1613_v61, 0.0 }
 0x1ed   : > { %v3668_v0 = vpop.f32.mrf.mxu1 }
 0x1ee   : > { %v1806_v3 = vmax.f32 %v1608_v63, 0.0  ;;  %2867 = vrot.lane.b32.xlu0 %v2866_v53, %s2979_s16 }
 0x1ef   : > { %v3671_v4 = vpop.f32.mrf.mxu1 }
 0x1f0   : > { %v2871_v56 = vpack.i.bf16 %v1807_v55, %v1806_v3 }
 0x1f1   : > { %v3673_v2 = vpop.f32.mrf.mxu1 }
 0x1f2   : > { %2872 = vrot.lane.b32.xlu1 %v2871_v56, %s2979_s16 }
 0x1f3   : > { %v3676_v9 = vpop.f32.mrf.mxu1 }
 0x1f5   : > { %v3678_v28 = vpop.f32.mrf.mxu1 }
 0x1f7   : > { %v3680_v5 = vpop.f32.mrf.mxu1 }
 0x1f9   : > { %v3682_v16 = vpop.f32.mrf.mxu1 }
 0x1fb   : > { %v3684_v6 = vpop.f32.mrf.mxu1 }
 0x1fd   : > { %v3686_v46 = vpop.f32.mrf.mxu1 }
 0x1ff   : > { %v3688_v47 = vpop.f32.mrf.mxu1 }
 0x201   : > { %v3690_v48 = vpop.f32.mrf.mxu1 }
 0x203   : > { %v3692_v49 = vpop.f32.mrf.mxu1 }
 0x205   : > { %v3694_v50 = vpop.f32.mrf.mxu1 }
 0x207   : > { %v3696_v54 = vpop.f32.mrf.mxu1 }
 0x209   : > { %v3698_v7 = vpop.f32.mrf.mxu1 }
 0x20b   : > { %v3700_v57 = vpop.f32.mrf.mxu1 }
 0x20d   : > { %v2771_v18 = vpop.f32.mrf.mxu1 }
 0x20e   : > { %v1703_v19 = vadd.f32 %v2771_v18, %v3644_v58 }
 0x20f   : > { %v1697_v10 = vpop.f32.mrf.mxu1 }
 0x210   : > { %v1698_v20 = vadd.f32 %v3644_v58, %v1697_v10  ;;  %v1825_v24 = vmax.f32 %v1703_v19, 0.0 }
 0x211   : > { %v2774_v23 = vpop.f32.mrf.mxu1 }
 0x212   : > { %v1824_v25 = vmax.f32 %v1698_v20, 0.0  ;;  %v1713_v26 = vadd.f32 %v2774_v23, %v3644_v58 }
 0x213   : > { %v1707_v60 = vpop.f32.mrf.mxu1 }
 0x214   : > { %v2876_v11 = vpack.i.bf16 %v1825_v24, %v1824_v25  ;;  %v1708_v12 = vadd.f32 %v3644_v58, %v1707_v60  ;;  %v1827_v15 = vmax.f32 %v1713_v26, 0.0 }
 0x215   : > { %v2777_v13 = vpop.f32.mrf.mxu1 }
 0x216   : > { %v1826_v21 = vmax.f32 %v1708_v12, 0.0  ;;  %v1723_v22 = vadd.f32 %v2777_v13, %v3644_v58  ;;  %2877 = vrot.lane.b32.xlu0 %v2876_v11, %s2979_s16 }
 0x217   : > { %v1717_v30 = vpop.f32.mrf.mxu1 }
 0x218   : > { %v2881_v8 = vpack.i.bf16 %v1827_v15, %v1826_v21  ;;  %v1718_v17 = vadd.f32 %v3644_v58, %v1717_v30  ;;  %v1829_v31 = vmax.f32 %v1723_v22, 0.0 }
 0x219   : > { %v2780_v14 = vpop.f32.mrf.mxu1 }
 0x21a   : > { %v1828_v32 = vmax.f32 %v1718_v17, 0.0  ;;  %v1733_v27 = vadd.f32 %v2780_v14, %v3644_v58  ;;  %2882 = vrot.lane.b32.xlu1 %v2881_v8, %s2979_s16 }
 0x21b   : > { %v1727_v59 = vpop.f32.mrf.mxu1 }
 0x21c   : > { %v2886_v52 = vpack.i.bf16 %v1829_v31, %v1828_v32  ;;  %v1728_v61 = vadd.f32 %v3644_v58, %v1727_v59  ;;  %v1831_v53 = vmax.f32 %v1733_v27, 0.0 }
 0x21d   : > { %v2783_v62 = vpop.f32.mrf.mxu1 }
 0x21e   : > { %v1830_v63 = vmax.f32 %v1728_v61, 0.0  ;;  %v1743_v55 = vadd.f32 %v2783_v62, %v3644_v58  ;;  %2887 = vrot.lane.b32.xlu0 %v2886_v52, %s2979_s16  ;;  %v1463_v62 = vadd.f32 %v3609_v33, %v3644_v58 }
 0x21f   : > { %v1737_v3 = vpop.f32.mrf.mxu1 }
 0x220   : > { %v2891_v56 = vpack.i.bf16 %v1831_v53, %v1830_v63  ;;  %v1738_v18 = vadd.f32 %v3644_v58, %v1737_v3  ;;  %v1833_v10 = vmax.f32 %v1743_v55, 0.0  ;;  %v1458_v53 = vadd.f32 %v3644_v58, %v3611_v35 }
 0x221   : > { %v2786_v19 = vpop.f32.mrf.mxu1  ;;  %v1777_v63 = vmax.f32 %v1463_v62, 0.0 }
 0x222   : > { %v1832_v20 = vmax.f32 %v1738_v18, 0.0  ;;  %v1753_v23 = vadd.f32 %v2786_v19, %v3644_v58  ;;  %2892 = vrot.lane.b32.xlu1 %v2891_v56, %s2979_s16  ;;  %v1776_v55 = vmax.f32 %v1458_v53, 0.0  ;;  %v1473_v56 = vadd.f32 %v3613_v42, %v3644_v58 }
 0x223   : > { %v1747_v24 = vpop.f32.mrf.mxu1  ;;  %v1468_v18 = vadd.f32 %v3644_v58, %v3615_v44 }
 0x224   : > { %v2896_v25 = vpack.i.bf16 %v1833_v10, %v1832_v20  ;;  %v1748_v26 = vadd.f32 %v3644_v58, %v1747_v24  ;;  %v1835_v11 = vmax.f32 %v1753_v23, 0.0  ;;  %v1483_v20 = vadd.f32 %v3617_v51, %v3644_v58 }
 0x225   : > { %v2789_v60 = vpop.f32.mrf.mxu1  ;;  %v1478_v23 = vadd.f32 %v3644_v58, %v3619_v29  ;;  %v1779_v42 = vmax.f32 %v1473_v56, 0.0 }
 0x226   : > { %v1834_v12 = vmax.f32 %v1748_v26, 0.0  ;;  %v1763_v13 = vadd.f32 %v2789_v60, %v3644_v58  ;;  %2897 = vrot.lane.b32.xlu0 %v2896_v25, %s2979_s16  ;;  %v1778_v60 = vmax.f32 %v1468_v18, 0.0 }
 0x227   : > { %v1757_v15 = vpop.f32.mrf.mxu1 }
 0x228   : > { %v2901_v21 = vpack.i.bf16 %v1835_v11, %v1834_v12  ;;  %v1758_v22 = vadd.f32 %v3644_v58, %v1757_v15  ;;  %v1837_v8 = vmax.f32 %v1763_v13, 0.0  ;;  %v1781_v12 = vmax.f32 %v1483_v20, 0.0 }
 0x229   : > { %v2792_v30 = vpop.f32.mrf.mxu1  ;;  %v1780_v13 = vmax.f32 %v1478_v23, 0.0 }
 0x22a   : > { %v1836_v17 = vmax.f32 %v1758_v22, 0.0  ;;  %v1773_v14 = vadd.f32 %v2792_v30, %v3644_v58  ;;  %2902 = vrot.lane.b32.xlu1 %v2901_v21, %s2979_s16  ;;  %v1493_v30 = vadd.f32 %v3621_v1, %v3644_v58  ;;  %v1498_v1 = vadd.f32 %v3644_v58, %v3627_v37 }
 0x22b   : > { %v1767_v31 = vpop.f32.mrf.mxu1 }
 0x22c   : > { %v2906_v32 = vpack.i.bf16 %v1837_v8, %v1836_v17  ;;  %v1768_v27 = vadd.f32 %v3644_v58, %v1767_v31  ;;  %v1839_v59 = vmax.f32 %v1773_v14, 0.0  ;;  %v1488_v8 = vadd.f32 %v3644_v58, %v3623_v34 }
 0x22d   : > { %v1784_v56 = vmax.f32 %v1498_v1, 0.0 }
 0x22e   : > { %v1838_v52 = vmax.f32 %v1768_v27, 0.0  ;;  %2907 = vrot.lane.b32.xlu0 %v2906_v32, %s2979_s16  ;;  %v1503_v27 = vadd.f32 %v3625_v36, %v3644_v58  ;;  %v1782_v62 = vmax.f32 %v1488_v8, 0.0 }
 0x230   : > { %v2911_v61 = vpack.i.bf16 %v1839_v59, %v1838_v52 }
 0x232   : > { %2912 = vrot.lane.b32.xlu1 %v2911_v61, %s2979_s16  ;;  %v1783_v61 = vmax.f32 %v1493_v30, 0.0  ;;  %v1528_v30 = vadd.f32 %v3644_v58, %v3639_v45 }
 0x248   : > { %v2838_v3 = vpop.permute.xlu0 %2837 }
 0x249   : > { %v2840_v19 = vunpack.i.h.bf16 %v2838_v3  ;;  %v2839_v10 = vunpack.i.l.bf16 %v2838_v3  ;;  %v1785_v3 = vmax.f32 %v1503_v27, 0.0 }
 0x24b   : > { %v1906_v33 = vsel %vm1904_vm1, %v1777_v63, %v2840_v19  ;;  %v1905_v35 = vsel %vm1904_vm1, %v1776_v55, %v2839_v10  ;;  %v1513_v10 = vadd.f32 %v3629_v38, %v3644_v58  ;;  %v1518_v38 = vadd.f32 %v3644_v58, %v3635_v41 }
 0x24c   : > { %v2434_v24 = vpack.c.bf16 %v1906_v33, %v1906_v33  ;;  %v2433_v25 = vpack.c.bf16 %v1905_v35, %v1905_v35  ;;  %v2843_v26 = vpop.permute.xlu0 %2842  ;;  %v1508_v33 = vadd.f32 %v3644_v58, %v3631_v39 }
 0x24d   : > { %v2845_v11 = vunpack.i.h.bf16 %v2843_v26  ;;  %v2844_v44 = vunpack.i.l.bf16 %v2843_v26 }
 0x24e   : > { %2066 = vst.msk [vmem:[%s3743_s19] sm:$0xf] %vm2065_vm2, %v2433_v25  ;;  %2067 = vst.msk [vmem:[%s3743_s19 + $0x4] sm:$0xf] %vm2065_vm2, %v2434_v24  ;;  %v1523_v25 = vadd.f32 %v3633_v40, %v3644_v58 }
 0x24f   : > { %v1908_v51 = vsel %vm1904_vm1, %v1779_v42, %v2845_v11  ;;  %v1907_v29 = vsel %vm1904_vm1, %v1778_v60, %v2844_v44  ;;  %v1787_v60 = vmax.f32 %v1513_v10, 0.0  ;;  %v1786_v11 = vmax.f32 %v1508_v33, 0.0 }
 0x250   : > { %v2436_v15 = vpack.c.bf16 %v1908_v51, %v1908_v51  ;;  %v2435_v21 = vpack.c.bf16 %v1907_v29, %v1907_v29  ;;  %v2848_v22 = vpop.permute.xlu1 %2847 }
 0x251   : > { %v2850_v17 = vunpack.i.h.bf16 %v2848_v22  ;;  %v2849_v14 = vunpack.i.l.bf16 %v2848_v22  ;;  %v1533_v22 = vadd.f32 %v3637_v43, %v3644_v58 }
 0x252   : > { %2068 = vst.msk [vmem:[%s3743_s19 + $0x10] sm:$0xf] %vm2065_vm2, %v2435_v21  ;;  %2069 = vst.msk [vmem:[%s3743_s19 + $0x14] sm:$0xf] %vm2065_vm2, %v2436_v15 }
 0x253   : > { %v1910_v31 = vsel %vm1904_vm1, %v1781_v12, %v2850_v17  ;;  %v1909_v32 = vsel %vm1904_vm1, %v1780_v13, %v2849_v14  ;;  %v1789_v12 = vmax.f32 %v1523_v25, 0.0  ;;  %v1788_v13 = vmax.f32 %v1518_v38, 0.0 }
 0x254   : > { %v2438_v59 = vpack.c.bf16 %v1910_v31, %v1910_v31  ;;  %v2437_v34 = vpack.c.bf16 %v1909_v32, %v1909_v32  ;;  %v2853_v52 = vpop.permute.xlu1 %2852  ;;  %v1791_v43 = vmax.f32 %v1533_v22, 0.0 }
 0x255   : > { %v2855_v53 = vunpack.i.h.bf16 %v2853_v52  ;;  %v2854_v63 = vunpack.i.l.bf16 %v2853_v52 }
 0x256   : > { %2070 = vst.msk [vmem:[%s3743_s19 + $0x20] sm:$0xf] %vm2065_vm2, %v2437_v34  ;;  %2071 = vst.msk [vmem:[%s3743_s19 + $0x24] sm:$0xf] %vm2065_vm2, %v2438_v59  ;;  %v1790_v59 = vmax.f32 %v1528_v30, 0.0 }
 0x257   : > { %v1912_v55 = vsel %vm1904_vm1, %v1783_v61, %v2855_v53  ;;  %v1911_v36 = vsel %vm1904_vm1, %v1782_v62, %v2854_v63  ;;  %v1623_v63 = vadd.f32 %v3668_v0, %v3644_v58 }
 0x258   : > { %v2440_v37 = vpack.c.bf16 %v1912_v55, %v1912_v55  ;;  %v2439_v18 = vpack.c.bf16 %v1911_v36, %v1911_v36  ;;  %v2858_v19 = vpop.permute.xlu0 %2857  ;;  %v1618_v55 = vadd.f32 %v3644_v58, %v3671_v4  ;;  %v1643_v4 = vadd.f32 %v3678_v28, %v3644_v58 }
 0x259   : > { %v2860_v35 = vunpack.i.h.bf16 %v2858_v19  ;;  %v2859_v20 = vunpack.i.l.bf16 %v2858_v19  ;;  %v1809_v36 = vmax.f32 %v1623_v63, 0.0 }
 0x25a   : > { %2072 = vst.msk [vmem:[%s3743_s19 + $0x30] sm:$0xf] %vm2065_vm2, %v2439_v18  ;;  %2073 = vst.msk [vmem:[%s3743_s19 + $0x34] sm:$0xf] %vm2065_vm2, %v2440_v37  ;;  %v1633_v37 = vadd.f32 %v3673_v2, %v3644_v58  ;;  %v1628_v18 = vadd.f32 %v3644_v58, %v3676_v9 }
 0x25b   : > { %v1914_v23 = vsel %vm1904_vm1, %v1785_v3, %v2860_v35  ;;  %v1913_v24 = vsel %vm1904_vm1, %v1784_v56, %v2859_v20  ;;  %v1808_v3 = vmax.f32 %v1618_v55, 0.0  ;;  %v1638_v35 = vadd.f32 %v3644_v58, %v3680_v5 }
 0x25c   : > { %v2442_v26 = vpack.c.bf16 %v1914_v23, %v1914_v23  ;;  %v2441_v39 = vpack.c.bf16 %v1913_v24, %v1913_v24  ;;  %v2863_v42 = vpop.permute.xlu1 %2862  ;;  %v1811_v2 = vmax.f32 %v1633_v37, 0.0  ;;  %v1810_v25 = vmax.f32 %v1628_v18, 0.0 }
 0x25d   : > { %v2865_v44 = vunpack.i.h.bf16 %v2863_v42  ;;  %v2864_v51 = vunpack.i.l.bf16 %v2863_v42  ;;  %v1812_v42 = vmax.f32 %v1638_v35, 0.0 }
 0x25e   : > { %2074 = vst.msk [vmem:[%s3743_s19 + $0x40] sm:$0xf] %vm2065_vm2, %v2441_v39  ;;  %2075 = vst.msk [vmem:[%s3743_s19 + $0x44] sm:$0xf] %vm2065_vm2, %v2442_v26  ;;  %v1813_v39 = vmax.f32 %v1643_v4, 0.0  ;;  %v1688_v4 = vadd.f32 %v3644_v58, %v3700_v57 }
 0x25f   : > { %v1916_v29 = vsel %vm1904_vm1, %v1787_v60, %v2865_v44  ;;  %v1915_v40 = vsel %vm1904_vm1, %v1786_v11, %v2864_v51  ;;  %v1653_v44 = vadd.f32 %v3682_v16, %v3644_v58  ;;  %v1648_v51 = vadd.f32 %v3644_v58, %v3684_v6 }
 0x260   : > { %v2444_v41 = vpack.c.bf16 %v1916_v29, %v1916_v29  ;;  %v2443_v15 = vpack.c.bf16 %v1915_v40, %v1915_v40  ;;  %v2868_v21 = vpop.permute.xlu0 %2867  ;;  %v1658_v16 = vadd.f32 %v3644_v58, %v3688_v47 }
 0x261   : > { %v2870_v8 = vunpack.i.h.bf16 %v2868_v21  ;;  %v2869_v17 = vunpack.i.l.bf16 %v2868_v21  ;;  %v1815_v22 = vmax.f32 %v1653_v44, 0.0  ;;  %v1814_v30 = vmax.f32 %v1648_v51, 0.0 }
 0x262   : > { %2076 = vst.msk [vmem:[%s3743_s19 + $0x50] sm:$0xf] %vm2065_vm2, %v2443_v15  ;;  %2077 = vst.msk [vmem:[%s3743_s19 + $0x54] sm:$0xf] %vm2065_vm2, %v2444_v41  ;;  %v1663_v41 = vadd.f32 %v3686_v46, %v3644_v58 }
 0x263   : > { %v1918_v14 = vsel %vm1904_vm1, %v1789_v12, %v2870_v8  ;;  %v1917_v31 = vsel %vm1904_vm1, %v1788_v13, %v2869_v17 }
 0x264   : > { %v2446_v32 = vpack.c.bf16 %v1918_v14, %v1918_v14  ;;  %v2445_v27 = vpack.c.bf16 %v1917_v31, %v1917_v31  ;;  %v2873_v1 = vpop.permute.xlu1 %2872  ;;  %v1817_v31 = vmax.f32 %v1663_v41, 0.0 }
 0x265   : > { %v2875_v34 = vunpack.i.h.bf16 %v2873_v1  ;;  %v2874_v52 = vunpack.i.l.bf16 %v2873_v1 }
 0x266   : > { %2078 = vst.msk [vmem:[%s3743_s19 + $0x60] sm:$0xf] %vm2065_vm2, %v2445_v27  ;;  %2079 = vst.msk [vmem:[%s3743_s19 + $0x64] sm:$0xf] %vm2065_vm2, %v2446_v32  ;;  %v1816_v32 = vmax.f32 %v1658_v16, 0.0 }
 0x267   : > { %v1920_v45 = vsel %vm1904_vm1, %v1791_v43, %v2875_v34  ;;  %v1919_v61 = vsel %vm1904_vm1, %v1790_v59, %v2874_v52  ;;  %v1673_v43 = vadd.f32 %v3690_v48, %v3644_v58  ;;  %v1668_v59 = vadd.f32 %v3644_v58, %v3692_v49 }
 0x268   : > { %v2448_v62 = vpack.c.bf16 %v1920_v45, %v1920_v45  ;;  %v2447_v53 = vpack.c.bf16 %v1919_v61, %v1919_v61  ;;  %v1678_v48 = vadd.f32 %v3644_v58, %v3696_v54 }
 0x269   : > { %v1819_v55 = vmax.f32 %v1673_v43, 0.0 }
 0x26a   : > { %2080 = vst.msk [vmem:[%s3743_s19 + $0x70] sm:$0xf] %vm2065_vm2, %v2447_v53  ;;  %2081 = vst.msk [vmem:[%s3743_s19 + $0x74] sm:$0xf] %vm2065_vm2, %v2448_v62  ;;  %v1683_v62 = vadd.f32 %v3694_v50, %v3644_v58  ;;  %v1820_v54 = vmax.f32 %v1678_v48, 0.0 }
 0x26c   : > { %v1821_v18 = vmax.f32 %v1683_v62, 0.0 }
 0x288   : > { %v2878_v56 = vpop.permute.xlu0 %2877 }
 0x289   : > { %v2880_v19 = vunpack.i.h.bf16 %v2878_v56  ;;  %v2879_v10 = vunpack.i.l.bf16 %v2878_v56 }
 0x28b   : > { %v1986_v33 = vsel %vm1904_vm1, %v1809_v36, %v2880_v19  ;;  %v1985_v0 = vsel %vm1904_vm1, %v1808_v3, %v2879_v10  ;;  %v1818_v36 = vmax.f32 %v1668_v59, 0.0 }
 0x28c   : > { %v2450_v20 = vpack.c.bf16 %v1986_v33, %v1986_v33  ;;  %v2449_v23 = vpack.c.bf16 %v1985_v0, %v1985_v0  ;;  %v2883_v24 = vpop.permute.xlu1 %2882  ;;  %v1693_v0 = vadd.f32 %v3698_v7, %v3644_v58  ;;  %v1822_v7 = vmax.f32 %v1688_v4, 0.0 }
 0x28d   : > { %v2885_v38 = vunpack.i.h.bf16 %v2883_v24  ;;  %v2884_v9 = vunpack.i.l.bf16 %v2883_v24 }
 0x28e   : > { %2411 = vst.msk [vmem:[%s3743_s19 + $0x8] sm:$0xf] %vm2065_vm2, %v2449_v23  ;;  %2412 = vst.msk [vmem:[%s3743_s19 + $0xc] sm:$0xf] %vm2065_vm2, %v2450_v20  ;;  %v1823_v58 = vmax.f32 %v1693_v0, 0.0 }
 0x28f   : > { %v1988_v26 = vsel %vm1904_vm1, %v1811_v2, %v2885_v38  ;;  %v1987_v28 = vsel %vm1904_vm1, %v1810_v25, %v2884_v9 }
 0x290   : > { %v2452_v5 = vpack.c.bf16 %v1988_v26, %v1988_v26  ;;  %v2451_v60 = vpack.c.bf16 %v1987_v28, %v1987_v28  ;;  %v2888_v11 = vpop.permute.xlu0 %2887 }
 0x291   : > { %v2890_v29 = vunpack.i.h.bf16 %v2888_v11  ;;  %v2889_v40 = vunpack.i.l.bf16 %v2888_v11 }
 0x292   : > { %2413 = vst.msk [vmem:[%s3743_s19 + $0x18] sm:$0xf] %vm2065_vm2, %v2451_v60  ;;  %2414 = vst.msk [vmem:[%s3743_s19 + $0x1c] sm:$0xf] %vm2065_vm2, %v2452_v5 }
 0x293   : > { %v1990_v12 = vsel %vm1904_vm1, %v1813_v39, %v2890_v29  ;;  %v1989_v13 = vsel %vm1904_vm1, %v1812_v42, %v2889_v40 }
 0x294   : > { %v2454_v15 = vpack.c.bf16 %v1990_v12, %v1990_v12  ;;  %v2453_v6 = vpack.c.bf16 %v1989_v13, %v1989_v13  ;;  %v2893_v21 = vpop.permute.xlu1 %2892 }
 0x295   : > { %v2895_v8 = vunpack.i.h.bf16 %v2893_v21  ;;  %v2894_v17 = vunpack.i.l.bf16 %v2893_v21 }
 0x296   : > { %2415 = vst.msk [vmem:[%s3743_s19 + $0x28] sm:$0xf] %vm2065_vm2, %v2453_v6  ;;  %2416 = vst.msk [vmem:[%s3743_s19 + $0x2c] sm:$0xf] %vm2065_vm2, %v2454_v15 }
 0x297   : > { %v1992_v14 = vsel %vm1904_vm1, %v1815_v22, %v2895_v8  ;;  %v1991_v46 = vsel %vm1904_vm1, %v1814_v30, %v2894_v17 }
 0x298   : > { %v2456_v47 = vpack.c.bf16 %v1992_v14, %v1992_v14  ;;  %v2455_v27 = vpack.c.bf16 %v1991_v46, %v1991_v46  ;;  %v2898_v1 = vpop.permute.xlu0 %2897 }
 0x299   : > { %v2900_v34 = vunpack.i.h.bf16 %v2898_v1  ;;  %v2899_v52 = vunpack.i.l.bf16 %v2898_v1 }
 0x29a   : > { %2417 = vst.msk [vmem:[%s3743_s19 + $0x38] sm:$0xf] %vm2065_vm2, %v2455_v27  ;;  %2418 = vst.msk [vmem:[%s3743_s19 + $0x3c] sm:$0xf] %vm2065_vm2, %v2456_v47 }
 0x29b   : > { %v1994_v45 = vsel %vm1904_vm1, %v1817_v31, %v2900_v34  ;;  %v1993_v61 = vsel %vm1904_vm1, %v1816_v32, %v2899_v52 }
 0x29c   : > { %v2458_v53 = vpack.c.bf16 %v1994_v45, %v1994_v45  ;;  %v2457_v49 = vpack.c.bf16 %v1993_v61, %v1993_v61  ;;  %v2903_v63 = vpop.permute.xlu1 %2902 }
 0x29d   : > { %v2905_v3 = vunpack.i.h.bf16 %v2903_v63  ;;  %v2904_v56 = vunpack.i.l.bf16 %v2903_v63 }
 0x29e   : > { %2419 = vst.msk [vmem:[%s3743_s19 + $0x48] sm:$0xf] %vm2065_vm2, %v2457_v49  ;;  %2420 = vst.msk [vmem:[%s3743_s19 + $0x4c] sm:$0xf] %vm2065_vm2, %v2458_v53 }
 0x29f   : > { %v1996_v37 = vsel %vm1904_vm1, %v1819_v55, %v2905_v3  ;;  %v1995_v50 = vsel %vm1904_vm1, %v1818_v36, %v2904_v56 }
 0x2a0   : > { %v2460_v19 = vpack.c.bf16 %v1996_v37, %v1996_v37  ;;  %v2459_v10 = vpack.c.bf16 %v1995_v50, %v1995_v50  ;;  %v2908_v33 = vpop.permute.xlu0 %2907 }
 0x2a1   : > { %v2910_v35 = vunpack.i.h.bf16 %v2908_v33  ;;  %v2909_v20 = vunpack.i.l.bf16 %v2908_v33 }
 0x2a2   : > { %2421 = vst.msk [vmem:[%s3743_s19 + $0x58] sm:$0xf] %vm2065_vm2, %v2459_v10  ;;  %2422 = vst.msk [vmem:[%s3743_s19 + $0x5c] sm:$0xf] %vm2065_vm2, %v2460_v19 }
 0x2a3   : > { %v1998_v23 = vsel %vm1904_vm1, %v1821_v18, %v2910_v35  ;;  %v1997_v24 = vsel %vm1904_vm1, %v1820_v54, %v2909_v20 }
 0x2a4   : > { %v2462_v2 = vpack.c.bf16 %v1998_v23, %v1998_v23  ;;  %v2461_v25 = vpack.c.bf16 %v1997_v24, %v1997_v24  ;;  %v2913_v38 = vpop.permute.xlu1 %2912 }
 0x2a5   : > { %v2915_v57 = vunpack.i.h.bf16 %v2913_v38  ;;  %v2914_v9 = vunpack.i.l.bf16 %v2913_v38 }
 0x2a6   : > { %2423 = vst.msk [vmem:[%s3743_s19 + $0x68] sm:$0xf] %vm2065_vm2, %v2461_v25  ;;  %2424 = vst.msk [vmem:[%s3743_s19 + $0x6c] sm:$0xf] %vm2065_vm2, %v2462_v2 }
 0x2a7   : > { %v2000_v26 = vsel %vm1904_vm1, %v1823_v58, %v2915_v57  ;;  %v1999_v28 = vsel %vm1904_vm1, %v1822_v7, %v2914_v9 }
 0x2a8   : > { %v2464_v39 = vpack.c.bf16 %v2000_v26, %v2000_v26  ;;  %v2463_v42 = vpack.c.bf16 %v1999_v28, %v1999_v28 }
 0x2aa   : > { %2425 = vst.msk [vmem:[%s3743_s19 + $0x78] sm:$0xf] %vm2065_vm2, %v2463_v42  ;;  %2426 = vst.msk [vmem:[%s3743_s19 + $0x7c] sm:$0xf] %vm2065_vm2, %v2464_v39 }
 0x2ab   : > { %2929 = shalt.err (!%p2926_p3)
}
 0x2ac   : > { %s2930_s15 = scalar_lea.hbm %s3892_s29, 2048  ;;  %s2934_s18 = scalar_lea.hbm %s3949_s7, 4096 }
 0x2ad   : > { %p2931_p4 = scmp.ne.s32.totalorder %s3892_s29, %s2930_s15  ;;  %p2935_p9 = scmp.lt.s32.totalorder %s3892_s29, %s3949_s7 }
 0x2ae   : > { %p2936_p10 = scmp.lt.s32.totalorder %s2934_s18, %s2930_s15 }
 0x2af   : > { %p2932_p7 = pnand %p2931_p4, %p3061_p5 }
 0x2b0   : > { %p2937_p11 = por %p2936_p10, %p2935_p9 }
 0x2b1   : > { %p2933_p8 = pneg %p2932_p7 }
 0x2b3   : > { %p2938_p12 = pnand %p2937_p11, %p2933_p8 }
 0x2b5   : > { %2941 = shalt.err (!%p2938_p12)
}
 0x2b6   : > { %s2981_s22 = smov 64   ;;  %s2982_s23 = smov 4  }
 0x2b7   : > { %2793 = dma.vmem_to_hbm [thread:$0]  (%p3061_p5), %s3894_s21, 2048, %s3892_s29, %s3902_s28, %s2981_s22, %s2981_s22, %s2982_s23  }
 0x2b8 PF: > { %p2799_p13 = scmp.ge.s32.totalorder %s2976_s27, 2  ;;  %s2193_s8 = sand.u32 1, %s2964_s24  }
 0x2b9   : > { %s2194_s9 = scalar_lea.sflag [#allocation3], %s2193_s8 }
 0x2ba   : > { %p2796_p0 = pnand %p2799_p13, %p3065_p6 }
 0x2bc   : > { %p2797_p1 = pneg %p2796_p0 }
 0x2be   : > { %2959 = dma.done.wait (%p2797_p1), %s2194_s9, 2048  }
 0x2bf   : > { %2961 = vsyncadd (%p2797_p1), %s2194_s9, 4294965248  ;;  %p17_p2 = scmp.ge.s32.totalorder %s3048_s30, 4   ;;  %s3952_s24 = smov %s2968_s25 }
 0x2c0   : > { %s3953_s25 = smov %s2972_s26  ;;  %s3954_s26 = smov %s3059_s10 }
 0x2c1   : > { %s3955_s27 = smov %s3048_s30  ;;  %19 = sbr.rel (!%p17_p2) target bundleno = 3 (0x3), region = 84 }
 0x2c6   :  { %2199 = vsyncpa [#allocation3], 1 }
 0x2c7   :  { %2201 = vsyncpa [#allocation3 + $0x1], 1 }

</bundles_post_ra>
